<compile_context>
chip_gen: v6e
topology: v6e:2x2x1
jax: 0.10.0
libtpu: 0.0.40
codegen_flags: <defaults>
</compile_context>

<pallas_src>
import functools
import math

import jax
import jax.numpy as jnp
from jax.experimental import pallas as pl
from jax.experimental.pallas import tpu as pltpu

LANE = 128


def _round_up(a, b):
    return ((a + b - 1) // b) * b


def _next_pow2(x):
    return 1 if x <= 1 else 1 << (x - 1).bit_length()


def _pick_config():
    """(row-tile target, vmem limit bytes) per TPU generation."""
    try:
        kind = jax.devices()[0].device_kind.lower()
    except Exception:
        kind = ""
    if "v5" in kind or "v6" in kind:
        return 1024, 64 * 1024 * 1024      # 128 MiB physical VMEM
    return 512, 48 * 1024 * 1024           # v7x / unknown: 64 MiB physical VMEM


def _layer_lconv(ksize, dilation, seq_len):
    rf = (ksize - 1) * dilation + 1
    return seq_len + 2 * (rf // 2) - (rf - 1)    # seq_len (odd rf) or seq_len+1


# ----------------------------------------------------------------------------
# Kernel A: Conv1d tile. Prologue optionally applies the producer conv's
# BatchNorm scale/shift + GELU (consumer-side fusion) and always applies the
# position mask that implements the "same" zero padding / trim. Epilogue emits
# per-tile partial BatchNorm statistics (f32) of THIS conv's raw output.
# ----------------------------------------------------------------------------
def _conv_kernel(*refs, ktaps, dilation, pad, hb, tile_l, seq_len, l_conv,
                 fuse_norm):
    if fuse_norm:
        (yl_ref, ym_ref, yr_ref, sc_ref, sh_ref, w_ref, b_ref,
         out_ref, st_ref) = refs
    else:
        (yl_ref, ym_ref, yr_ref, w_ref, b_ref, out_ref, st_ref) = refs

    t = pl.program_id(0)
    # Stitch (left halo | main tile | right halo) of the producer buffer.
    win = jnp.concatenate([yl_ref[...], ym_ref[...], yr_ref[...]], axis=0)
    rows = t * tile_l - hb + jax.lax.broadcasted_iota(
        jnp.int32, (tile_l + 2 * hb, 1), 0)
    valid = (rows >= 0) & (rows < seq_len)       # left "same" pad + trim
    if fuse_norm:
        z = win.astype(jnp.float32) * sc_ref[...] + sh_ref[...]
        # tanh-approximation GELU (EUP slot; essentially free under the mem bound).
        # TODO(synk): switch to exact erf-GELU once lax.erf lowering is guaranteed.
        c = 0.7978845608028654   # sqrt(2/pi)
        z = 0.5 * z * (1.0 + jnp.tanh(c * (z + 0.044715 * z * z * z)))
        xwin = jnp.where(valid, z, 0.0).astype(jnp.bfloat16)
    else:
        xwin = jnp.where(valid, win, jnp.zeros_like(win))

    # K accumulating depth-C_in matmuls (channels padded to lane multiples, so
    # no im2col concatenate / cross-lane relayout).
    base = hb - pad
    acc = jnp.dot(xwin[base:base + tile_l, :], w_ref[0],
                  preferred_element_type=jnp.float32)
    for k in range(1, ktaps):
        o = base + k * dilation
        acc = acc + jnp.dot(xwin[o:o + tile_l, :], w_ref[k],
                            preferred_element_type=jnp.float32)
    acc = acc + b_ref[...]
    out_ref[...] = acc.astype(out_ref.dtype)

    # Partial BN statistics (torch normalizes BEFORE the even-rf trim, so the
    # mask uses l_conv, not seq_len).
    orow = t * tile_l + jax.lax.broadcasted_iota(jnp.int32, (tile_l, 1), 0)
    am = jnp.where(orow < l_conv, acc, 0.0)
    s = jnp.sum(am, axis=0, keepdims=True)
    ss = jnp.sum(am * am, axis=0, keepdims=True)
    c_out = acc.shape[1]
    st_ref[...] = jnp.concatenate(
        [s, ss, jnp.zeros((6, c_out), jnp.float32)], axis=0)


# ----------------------------------------------------------------------------
# Kernel B: BN scale/shift + GELU + residual add + trim/zero (block output only).
# ----------------------------------------------------------------------------
def _norm_res_kernel(y_ref, sc_ref, sh_ref, r_ref, o_ref, *, tile_l, seq_len):
    t = pl.program_id(0)
    z = y_ref[...].astype(jnp.float32) * sc_ref[...] + sh_ref[...]
    c = 0.7978845608028654
    z = 0.5 * z * (1.0 + jnp.tanh(c * (z + 0.044715 * z * z * z)))
    z = z + r_ref[...].astype(jnp.float32)
    rows = t * tile_l + jax.lax.broadcasted_iota(jnp.int32, (tile_l, 1), 0)
    # Rows >= seq_len (trim + layout padding) stay exactly zero so the next
    # layer's "same" zero padding remains correct.
    o_ref[...] = jnp.where(rows < seq_len, z, 0.0).astype(o_ref.dtype)


# ----------------------------------------------------------------------------
# Wrappers
# ----------------------------------------------------------------------------
def _conv_pass(x, w, bias, scale, shift, *, dilation, ktaps, seq_len, l_conv,
               tile_l, vmem_limit):
    """One Conv1d('same') over x (N, L_pad, C_in_pad) bf16.  If scale/shift are
    given, the producer's BN+GELU is applied to x inside the kernel prologue.
    Returns (raw conv output bf16 (N, L_pad, C_out_pad), partial stats f32)."""
    n, l_pad, c_in = x.shape
    c_out = w.shape[2]
    t_tiles = l_pad // tile_l
    halo = (ktaps - 1) * dilation
    pad = (halo + 1) // 2
    hb = max(16, _next_pow2(max(halo, 1)))       # bf16 sublane-tile aligned halo
    hstep = tile_l // hb
    n_hb = l_pad // hb

    fuse = scale is not None
    kern = functools.partial(_conv_kernel, ktaps=ktaps, dilation=dilation,
                             pad=pad, hb=hb, tile_l=tile_l, seq_len=seq_len,
                             l_conv=l_conv, fuse_norm=fuse)

    in_specs = [
        # left halo block (clamped at t=0; those positions are masked anyway)
        pl.BlockSpec((None, hb, c_in),
                     lambda t, i: (i, jnp.maximum(t * hstep - 1, 0), 0)),
        # main tile
        pl.BlockSpec((None, tile_l, c_in), lambda t, i: (i, t, 0)),
        # right halo block (clamped on the last tile; masked positions)
        pl.BlockSpec((None, hb, c_in),
                     lambda t, i: (i, jnp.minimum((t + 1) * hstep, n_hb - 1), 0)),
    ]
    inputs = [x, x, x]
    if fuse:
        in_specs += [pl.BlockSpec((1, c_in), lambda t, i: (0, 0)),
                     pl.BlockSpec((1, c_in), lambda t, i: (0, 0))]
        inputs += [scale, shift]
    in_specs += [pl.BlockSpec((ktaps, c_in, c_out), lambda t, i: (0, 0, 0)),
                 pl.BlockSpec((1, c_out), lambda t, i: (0, 0))]
    inputs += [w, bias]

    y, st = pl.pallas_call(
        kern,
        out_shape=(jax.ShapeDtypeStruct((n, l_pad, c_out), jnp.bfloat16),
                   jax.ShapeDtypeStruct((n, t_tiles, 8, c_out), jnp.float32)),
        grid=(t_tiles, n),                        # tile axis leads (v7x 2-TC sharding)
        in_specs=in_specs,
        out_specs=(pl.BlockSpec((None, tile_l, c_out), lambda t, i: (i, t, 0)),
                   pl.BlockSpec((None, None, 8, c_out),
                                lambda t, i: (i, t, 0, 0))),
        compiler_params=pltpu.CompilerParams(
            dimension_semantics=("parallel", "parallel"),
            vmem_limit_bytes=vmem_limit),
    )(*inputs)
    return y, st


def _bn_affine(st, gamma, beta, count, eps=1e-5):
    """Combine per-tile partial sums into BatchNorm (training-mode) scale/shift."""
    s = jnp.sum(st[:, :, 0, :], axis=(0, 1))
    ss = jnp.sum(st[:, :, 1, :], axis=(0, 1))
    mean = s / count
    var = jnp.maximum(ss / count - mean * mean, 0.0)
    inv = jax.lax.rsqrt(var + eps)
    scale = (gamma * inv)[None, :].astype(jnp.float32)
    shift = (beta - mean * gamma * inv)[None, :].astype(jnp.float32)
    return scale, shift


def _norm_res_pass(y, scale, shift, res, *, seq_len, tile_l, vmem_limit):
    n, l_pad, c = y.shape
    t_tiles = l_pad // tile_l
    kern = functools.partial(_norm_res_kernel, tile_l=tile_l, seq_len=seq_len)
    return pl.pallas_call(
        kern,
        out_shape=jax.ShapeDtypeStruct((n, l_pad, c), jnp.bfloat16),
        grid=(t_tiles, n),
        in_specs=[pl.BlockSpec((None, tile_l, c), lambda t, i: (i, t, 0)),
                  pl.BlockSpec((1, c), lambda t, i: (0, 0)),
                  pl.BlockSpec((1, c), lambda t, i: (0, 0)),
                  pl.BlockSpec((None, tile_l, c), lambda t, i: (i, t, 0))],
        out_specs=pl.BlockSpec((None, tile_l, c), lambda t, i: (i, t, 0)),
        compiler_params=pltpu.CompilerParams(
            dimension_semantics=("parallel", "parallel"),
            vmem_limit_bytes=vmem_limit),
    )(y, scale, shift, res)


def backbone_forward(x_ncl, params, *, eps=1e-5):
    """x_ncl: (N, C_in, L) -> (N, C_last, L), matching Backbone.forward."""
    n, c0, seq_len = x_ncl.shape
    tile_cfg, vmem_limit = _pick_config()

    # One common row tiling for the whole network (padded length L_pad is a
    # multiple of every layer's halo block, and covers l_conv <= seq_len + 1).
    hb_max = 16
    for blk in params:
        for conv in (blk["conv1"], blk["conv2"]):
            halo = (conv["ksize"] - 1) * blk["dilation"]
            hb_max = max(hb_max, _next_pow2(max(halo, 1)))
    tl = _round_up(min(tile_cfg, _round_up(seq_len + 1, hb_max)), hb_max)
    t_tiles = pl.cdiv(seq_len + 1, tl)
    l_pad = t_tiles * tl

    # One-time boundary prep: NCL -> NLC, channels padded to a lane multiple,
    # rows padded to L_pad with zeros, bf16.
    c0_pad = params[0]["conv1"]["c_in_pad"]
    act = jnp.transpose(x_ncl, (0, 2, 1)).astype(jnp.bfloat16)
    act = jnp.pad(act, ((0, 0), (0, l_pad - seq_len), (0, c0_pad - c0)))

    for blk in params:
        d = blk["dilation"]
        p1, p2 = blk["conv1"], blk["conv2"]
        residual = act
        l_conv1 = _layer_lconv(p1["ksize"], d, seq_len)
        l_conv2 = _layer_lconv(p2["ksize"], d, seq_len)

        # conv1: raw conv output + partial BN stats (input already normalized).
        y1, st1 = _conv_pass(act, p1["w"], p1["bias"], None, None,
                             dilation=d, ktaps=p1["ksize"], seq_len=seq_len,
                             l_conv=l_conv1, tile_l=tl, vmem_limit=vmem_limit)
        sc1, sh1 = _bn_affine(st1, p1["gamma"], p1["beta"],
                              float(n * l_conv1), eps)

        # conv2: BN1 + GELU fused into the prologue (consumer-side fusion).
        y2, st2 = _conv_pass(y1, p2["w"], p2["bias"], sc1, sh1,
                             dilation=d, ktaps=p2["ksize"], seq_len=seq_len,
                             l_conv=l_conv2, tile_l=tl, vmem_limit=vmem_limit)
        sc2, sh2 = _bn_affine(st2, p2["gamma"], p2["beta"],
                              float(n * l_conv2), eps)

        # BN2 + GELU + residual: materialize the block output (bf16, padded).
        act = _norm_res_pass(y2, sc2, sh2, residual, seq_len=seq_len,
                             tile_l=tl, vmem_limit=vmem_limit)

    c_last = params[-1]["conv2"]["c_out"]
    out = act[:, :seq_len, :c_last].astype(jnp.float32)
    return jnp.transpose(out, (0, 2, 1))


# ----------------------------------------------------------------------------
# Deterministic parameter construction (Conv1d default-style uniform init),
# channel-padded once to lane multiples.
# ----------------------------------------------------------------------------
def _init_same_pad_conv(key, c_in, c_out, ksize):
    c_in_pad = _round_up(c_in, LANE)
    c_out_pad = _round_up(c_out, LANE)
    kw, kb = jax.random.split(key)
    bound = 1.0 / math.sqrt(c_in * ksize)
    # weight stored as (K, C_in, C_out) == torch (C_out, C_in, K) permuted.
    w = jax.random.uniform(kw, (ksize, c_in, c_out), jnp.float32, -bound, bound)
    b = jax.random.uniform(kb, (c_out,), jnp.float32, -bound, bound)
    # Padded output channels carry bias=gamma=beta=0 -> stay exactly zero.
    w = jnp.pad(w, ((0, 0), (0, c_in_pad - c_in), (0, c_out_pad - c_out)))
    b = jnp.pad(b, (0, c_out_pad - c_out))
    gamma = jnp.pad(jnp.ones((c_out,), jnp.float32), (0, c_out_pad - c_out))
    beta = jnp.zeros((c_out_pad,), jnp.float32)
    return {"w": w.astype(jnp.bfloat16),
            "bias": b[None, :].astype(jnp.float32),
            "gamma": gamma, "beta": beta, "ksize": ksize,
            "c_in": c_in, "c_out": c_out,
            "c_in_pad": c_in_pad, "c_out_pad": c_out_pad}


def init_backbone(key, input_dim, dim_list, dilation, kernel_size):
    params = []
    prev = input_dim
    for i, dch in enumerate(dim_list):
        key, k1, k2 = jax.random.split(key, 3)
        params.append({"conv1": _init_same_pad_conv(k1, prev, dch, kernel_size),
                       "conv2": _init_same_pad_conv(k2, dch, dch, kernel_size),
                       "dilation": dilation[i]})
        prev = dch
    return params


if __name__ == "__main__":
    key = jax.random.PRNGKey(0)
    n, input_dim, seq_len = 2, 8, 16
    dim_list = [8, 8]          # ConvBlock's residual add implies output_dim == input_dim
    dilation = [1, 2]
    kernel_size = 4            # even receptive field at d=1 exercises the trim path

    k_x, k_p = jax.random.split(key)
    x = jax.random.normal(k_x, (n, input_dim, seq_len), jnp.float32)
    params = init_backbone(k_p, input_dim, dim_list, dilation, kernel_size)

    fwd = jax.jit(lambda xx: backbone_forward(xx, params))
    out = jax.block_until_ready(fwd(x))
    assert out.shape == (n, dim_list[-1], seq_len), out.shape
    assert bool(jnp.all(jnp.isfinite(out)))
    print("KERNEL_OK")
</pallas_src>

<mosaic_0001>
module attributes {stable_mosaic.version = 11 : i64} {
  func.func @_conv_kernel(%arg0: i32, %arg1: i32, %arg2: memref<1x16x128xbf16, #tpu.memory_space<vmem>>, %arg3: memref<1x32x128xbf16, #tpu.memory_space<vmem>>, %arg4: memref<1x16x128xbf16, #tpu.memory_space<vmem>>, %arg5: memref<4x128x128xbf16, #tpu.memory_space<vmem>>, %arg6: memref<1x128xf32, #tpu.memory_space<vmem>>, %arg7: memref<1x32x128xbf16, #tpu.memory_space<vmem>>, %arg8: memref<1x1x8x128xf32, #tpu.memory_space<vmem>>) attributes {dimension_semantics = [#tpu.dimension_semantics<parallel>, #tpu.dimension_semantics<parallel>], iteration_bounds = array<i64: 1, 2>, scalar_prefetch = 0 : i64, scratch_operands = 0 : i64, tpu.core_type = #tpu.core_type<tc>, window_params = [{transform_indices = @transform_0, window_bounds = array<i64: 1, 16, 128>}, {transform_indices = @transform_1, window_bounds = array<i64: 1, 32, 128>}, {transform_indices = @transform_2, window_bounds = array<i64: 1, 16, 128>}, {pipeline_mode = #tpu.pipeline_mode<synchronous>, transform_indices = @transform_3, window_bounds = array<i64: 4, 128, 128>}, {pipeline_mode = #tpu.pipeline_mode<synchronous>, transform_indices = @transform_4, window_bounds = array<i64: 1, 128>}, {transform_indices = @transform_5, window_bounds = array<i64: 1, 32, 128>}, {transform_indices = @transform_6, window_bounds = array<i64: 1, 1, 8, 128>}]} {
    %c0 = arith.constant 0 : index
    %c0_0 = arith.constant 0 : index
    %c0_1 = arith.constant 0 : index
    %0 = vector.load %arg2[%c0, %c0_0, %c0_1] : memref<1x16x128xbf16, #tpu.memory_space<vmem>>, vector<1x16x128xbf16>
    %1 = vector.shape_cast %0 : vector<1x16x128xbf16> to vector<16x128xbf16>
    %c0_2 = arith.constant 0 : index
    %c0_3 = arith.constant 0 : index
    %c0_4 = arith.constant 0 : index
    %2 = vector.load %arg3[%c0_2, %c0_3, %c0_4] : memref<1x32x128xbf16, #tpu.memory_space<vmem>>, vector<1x32x128xbf16>
    %3 = vector.shape_cast %2 : vector<1x32x128xbf16> to vector<32x128xbf16>
    %c0_5 = arith.constant 0 : index
    %c0_6 = arith.constant 0 : index
    %c0_7 = arith.constant 0 : index
    %4 = vector.load %arg4[%c0_5, %c0_6, %c0_7] : memref<1x16x128xbf16, #tpu.memory_space<vmem>>, vector<1x16x128xbf16>
    %5 = vector.shape_cast %4 : vector<1x16x128xbf16> to vector<16x128xbf16>
    %6 = tpu.concatenate %1, %3, %5 in 0 : vector<16x128xbf16>, vector<32x128xbf16>, vector<16x128xbf16> -> vector<64x128xbf16>
    %c32_i32 = arith.constant 32 : i32
    %7 = arith.muli %arg0, %c32_i32 : i32
    %c16_i32 = arith.constant 16 : i32
    %8 = arith.subi %7, %c16_i32 : i32
    %9 = tpu.iota {dimensions = array<i32: 0>} : vector<64x1xi32>
    %10 = vector.broadcast %8 : i32 to vector<64x1xi32>
    %11 = arith.addi %10, %9 : vector<64x1xi32>
    %c0_i32 = arith.constant 0 : i32
    %12 = vector.broadcast %c0_i32 : i32 to vector<64x1xi32>
    %13 = arith.cmpi sge, %11, %12 : vector<64x1xi32>
    %c16_i32_8 = arith.constant 16 : i32
    %14 = vector.broadcast %c16_i32_8 : i32 to vector<64x1xi32>
    %15 = arith.cmpi slt, %11, %14 : vector<64x1xi32>
    %16 = arith.andi %13, %15 : vector<64x1xi1>
    %cst = arith.constant 0.000000e+00 : bf16
    %17 = vector.broadcast %cst : bf16 to vector<64x128xbf16>
    %18 = vector.shape_cast %16 : vector<64x1xi1> to vector<64x1xi1>
    %19 = vector.broadcast %18 : vector<64x1xi1> to vector<64x128xi1>
    %20 = arith.select %19, %6, %17 : vector<64x128xi1>, vector<64x128xbf16>
    %21 = vector.extract_strided_slice %20 {offsets = [14, 0], sizes = [32, 128], strides = [1, 1]} : vector<64x128xbf16> to vector<32x128xbf16>
    %c0_9 = arith.constant 0 : index
    %c0_10 = arith.constant 0 : index
    %c0_11 = arith.constant 0 : index
    %22 = vector.load %arg5[%c0_9, %c0_10, %c0_11] : memref<4x128x128xbf16, #tpu.memory_space<vmem>>, vector<1x128x128xbf16>
    %23 = vector.shape_cast %22 : vector<1x128x128xbf16> to vector<128x128xbf16>
    %cst_12 = arith.constant dense<0.000000e+00> : vector<32x128xf32>
    %24 = tpu.matmul %21, %23, %cst_12 {dimension_numbers = #tpu.dot_dimension_numbers<[1], [0], [0], [1], [0, 0, 1, 1], [], []>} : vector<32x128xbf16>, vector<128x128xbf16>, vector<32x128xf32> -> vector<32x128xf32>
    %25 = vector.extract_strided_slice %20 {offsets = [15, 0], sizes = [32, 128], strides = [1, 1]} : vector<64x128xbf16> to vector<32x128xbf16>
    %c1 = arith.constant 1 : index
    %c0_13 = arith.constant 0 : index
    %c0_14 = arith.constant 0 : index
    %26 = vector.load %arg5[%c1, %c0_13, %c0_14] : memref<4x128x128xbf16, #tpu.memory_space<vmem>>, vector<1x128x128xbf16>
    %27 = vector.shape_cast %26 : vector<1x128x128xbf16> to vector<128x128xbf16>
    %cst_15 = arith.constant dense<0.000000e+00> : vector<32x128xf32>
    %28 = tpu.matmul %25, %27, %cst_15 {dimension_numbers = #tpu.dot_dimension_numbers<[1], [0], [0], [1], [0, 0, 1, 1], [], []>} : vector<32x128xbf16>, vector<128x128xbf16>, vector<32x128xf32> -> vector<32x128xf32>
    %29 = arith.addf %24, %28 : vector<32x128xf32>
    %30 = vector.extract_strided_slice %20 {offsets = [16, 0], sizes = [32, 128], strides = [1, 1]} : vector<64x128xbf16> to vector<32x128xbf16>
    %c2 = arith.constant 2 : index
    %c0_16 = arith.constant 0 : index
    %c0_17 = arith.constant 0 : index
    %31 = vector.load %arg5[%c2, %c0_16, %c0_17] : memref<4x128x128xbf16, #tpu.memory_space<vmem>>, vector<1x128x128xbf16>
    %32 = vector.shape_cast %31 : vector<1x128x128xbf16> to vector<128x128xbf16>
    %cst_18 = arith.constant dense<0.000000e+00> : vector<32x128xf32>
    %33 = tpu.matmul %30, %32, %cst_18 {dimension_numbers = #tpu.dot_dimension_numbers<[1], [0], [0], [1], [0, 0, 1, 1], [], []>} : vector<32x128xbf16>, vector<128x128xbf16>, vector<32x128xf32> -> vector<32x128xf32>
    %34 = arith.addf %29, %33 : vector<32x128xf32>
    %35 = vector.extract_strided_slice %20 {offsets = [17, 0], sizes = [32, 128], strides = [1, 1]} : vector<64x128xbf16> to vector<32x128xbf16>
    %c3 = arith.constant 3 : index
    %c0_19 = arith.constant 0 : index
    %c0_20 = arith.constant 0 : index
    %36 = vector.load %arg5[%c3, %c0_19, %c0_20] : memref<4x128x128xbf16, #tpu.memory_space<vmem>>, vector<1x128x128xbf16>
    %37 = vector.shape_cast %36 : vector<1x128x128xbf16> to vector<128x128xbf16>
    %cst_21 = arith.constant dense<0.000000e+00> : vector<32x128xf32>
    %38 = tpu.matmul %35, %37, %cst_21 {dimension_numbers = #tpu.dot_dimension_numbers<[1], [0], [0], [1], [0, 0, 1, 1], [], []>} : vector<32x128xbf16>, vector<128x128xbf16>, vector<32x128xf32> -> vector<32x128xf32>
    %39 = arith.addf %34, %38 : vector<32x128xf32>
    %c0_22 = arith.constant 0 : index
    %c0_23 = arith.constant 0 : index
    %40 = vector.load %arg6[%c0_22, %c0_23] : memref<1x128xf32, #tpu.memory_space<vmem>>, vector<1x128xf32>
    %41 = vector.broadcast %40 : vector<1x128xf32> to vector<32x128xf32>
    %42 = arith.addf %39, %41 : vector<32x128xf32>
    %43 = arith.truncf %42 : vector<32x128xf32> to vector<32x128xbf16>
    %c0_24 = arith.constant 0 : index
    %c0_25 = arith.constant 0 : index
    %c0_26 = arith.constant 0 : index
    %44 = vector.load %arg7[%c0_24, %c0_25, %c0_26] : memref<1x32x128xbf16, #tpu.memory_space<vmem>>, vector<1x32x128xbf16>
    %45 = vector.shape_cast %44 : vector<1x32x128xbf16> to vector<32x128xbf16>
    %46 = vector.shape_cast %43 : vector<32x128xbf16> to vector<1x32x128xbf16>
    tpu.vector_store %arg7[%c0_24, %c0_25, %c0_26], %46 {strides = array<i32>} : memref<1x32x128xbf16, #tpu.memory_space<vmem>>, vector<1x32x128xbf16>,
    %c32_i32_27 = arith.constant 32 : i32
    %47 = arith.muli %arg0, %c32_i32_27 : i32
    %48 = tpu.iota {dimensions = array<i32: 0>} : vector<32x1xi32>
    %49 = vector.broadcast %47 : i32 to vector<32x1xi32>
    %50 = arith.addi %49, %48 : vector<32x1xi32>
    %c17_i32 = arith.constant 17 : i32
    %51 = vector.broadcast %c17_i32 : i32 to vector<32x1xi32>
    %52 = arith.cmpi slt, %50, %51 : vector<32x1xi32>
    %cst_28 = arith.constant 0.000000e+00 : f32
    %53 = vector.shape_cast %52 : vector<32x1xi1> to vector<32x1xi1>
    %54 = vector.broadcast %53 : vector<32x1xi1> to vector<32x128xi1>
    %55 = vector.broadcast %cst_28 : f32 to vector<32x128xf32>
    %56 = arith.select %54, %42, %55 : vector<32x128xi1>, vector<32x128xf32>
    %cst_29 = arith.constant dense<0.000000e+00> : vector<128xf32>
    %57 = vector.multi_reduction <add>, %56, %cst_29 [0] : vector<32x128xf32> to vector<128xf32>
    %58 = vector.shape_cast %57 : vector<128xf32> to vector<1x128xf32>
    %59 = arith.mulf %56, %56 : vector<32x128xf32>
    %cst_30 = arith.constant dense<0.000000e+00> : vector<128xf32>
    %60 = vector.multi_reduction <add>, %59, %cst_30 [0] : vector<32x128xf32> to vector<128xf32>
    %61 = vector.shape_cast %60 : vector<128xf32> to vector<1x128xf32>
    %cst_31 = arith.constant 0.000000e+00 : f32
    %62 = vector.broadcast %cst_31 : f32 to vector<6x128xf32>
    %63 = tpu.concatenate %58, %61, %62 in 0 : vector<1x128xf32>, vector<1x128xf32>, vector<6x128xf32> -> vector<8x128xf32>
    %c0_32 = arith.constant 0 : index
    %c0_33 = arith.constant 0 : index
    %c0_34 = arith.constant 0 : index
    %c0_35 = arith.constant 0 : index
    %64 = vector.load %arg8[%c0_32, %c0_33, %c0_34, %c0_35] : memref<1x1x8x128xf32, #tpu.memory_space<vmem>>, vector<1x1x8x128xf32>
    %65 = vector.shape_cast %64 : vector<1x1x8x128xf32> to vector<8x128xf32>
    %66 = vector.shape_cast %63 : vector<8x128xf32> to vector<1x1x8x128xf32>
    tpu.vector_store %arg8[%c0_32, %c0_33, %c0_34, %c0_35], %66 {strides = array<i32>} : memref<1x1x8x128xf32, #tpu.memory_space<vmem>>, vector<1x1x8x128xf32>,
    return
  }
  func.func @transform_0(%arg0: i32, %arg1: i32) -> (i32, i32, i32) {
    %c2_i32 = arith.constant 2 : i32
    %0 = arith.muli %arg0, %c2_i32 : i32
    %c1_i32 = arith.constant 1 : i32
    %1 = arith.subi %0, %c1_i32 : i32
    %c0_i32 = arith.constant 0 : i32
    %2 = arith.maxsi %1, %c0_i32 : i32
    %c0_i32_0 = arith.constant 0 : i32
    %c0_i32_1 = arith.constant 0 : i32
    return %arg1, %2, %c0_i32_0 : i32, i32, i32
  }
  func.func @transform_1(%arg0: i32, %arg1: i32) -> (i32, i32, i32) {
    %c0_i32 = arith.constant 0 : i32
    %c0_i32_0 = arith.constant 0 : i32
    return %arg1, %arg0, %c0_i32 : i32, i32, i32
  }
  func.func @transform_2(%arg0: i32, %arg1: i32) -> (i32, i32, i32) {
    %c1_i32 = arith.constant 1 : i32
    %0 = arith.addi %arg0, %c1_i32 : i32
    %c2_i32 = arith.constant 2 : i32
    %1 = arith.muli %0, %c2_i32 : i32
    %c1_i32_0 = arith.constant 1 : i32
    %2 = arith.minsi %1, %c1_i32_0 : i32
    %c0_i32 = arith.constant 0 : i32
    %c0_i32_1 = arith.constant 0 : i32
    return %arg1, %2, %c0_i32 : i32, i32, i32
  }
  func.func @transform_3(%arg0: i32, %arg1: i32) -> (i32, i32, i32) {
    %c0_i32 = arith.constant 0 : i32
    %c0_i32_0 = arith.constant 0 : i32
    %c0_i32_1 = arith.constant 0 : i32
    %c0_i32_2 = arith.constant 0 : i32
    return %c0_i32, %c0_i32_0, %c0_i32_1 : i32, i32, i32
  }
  func.func @transform_4(%arg0: i32, %arg1: i32) -> (i32, i32) {
    %c0_i32 = arith.constant 0 : i32
    %c0_i32_0 = arith.constant 0 : i32
    %c0_i32_1 = arith.constant 0 : i32
    return %c0_i32, %c0_i32_0 : i32, i32
  }
  func.func @transform_5(%arg0: i32, %arg1: i32) -> (i32, i32, i32) {
    %c0_i32 = arith.constant 0 : i32
    %c0_i32_0 = arith.constant 0 : i32
    return %arg1, %arg0, %c0_i32 : i32, i32, i32
  }
  func.func @transform_6(%arg0: i32, %arg1: i32) -> (i32, i32, i32, i32) {
    %c0_i32 = arith.constant 0 : i32
    %c0_i32_0 = arith.constant 0 : i32
    %c0_i32_1 = arith.constant 0 : i32
    return %arg1, %arg0, %c0_i32, %c0_i32_0 : i32, i32, i32, i32
  }
}

module attributes {stable_mosaic.version = 11 : i64} {
  func.func @_conv_kernel(%arg0: i32, %arg1: i32, %arg2: memref<1x16x128xbf16, #tpu.memory_space<vmem>>, %arg3: memref<1x32x128xbf16, #tpu.memory_space<vmem>>, %arg4: memref<1x16x128xbf16, #tpu.memory_space<vmem>>, %arg5: memref<1x128xf32, #tpu.memory_space<vmem>>, %arg6: memref<1x128xf32, #tpu.memory_space<vmem>>, %arg7: memref<4x128x128xbf16, #tpu.memory_space<vmem>>, %arg8: memref<1x128xf32, #tpu.memory_space<vmem>>, %arg9: memref<1x32x128xbf16, #tpu.memory_space<vmem>>, %arg10: memref<1x1x8x128xf32, #tpu.memory_space<vmem>>) attributes {dimension_semantics = [#tpu.dimension_semantics<parallel>, #tpu.dimension_semantics<parallel>], iteration_bounds = array<i64: 1, 2>, scalar_prefetch = 0 : i64, scratch_operands = 0 : i64, tpu.core_type = #tpu.core_type<tc>, window_params = [{transform_indices = @transform_0, window_bounds = array<i64: 1, 16, 128>}, {transform_indices = @transform_1, window_bounds = array<i64: 1, 32, 128>}, {transform_indices = @transform_2, window_bounds = array<i64: 1, 16, 128>}, {pipeline_mode = #tpu.pipeline_mode<synchronous>, transform_indices = @transform_3, window_bounds = array<i64: 1, 128>}, {pipeline_mode = #tpu.pipeline_mode<synchronous>, transform_indices = @transform_4, window_bounds = array<i64: 1, 128>}, {pipeline_mode = #tpu.pipeline_mode<synchronous>, transform_indices = @transform_5, window_bounds = array<i64: 4, 128, 128>}, {pipeline_mode = #tpu.pipeline_mode<synchronous>, transform_indices = @transform_6, window_bounds = array<i64: 1, 128>}, {transform_indices = @transform_7, window_bounds = array<i64: 1, 32, 128>}, {transform_indices = @transform_8, window_bounds = array<i64: 1, 1, 8, 128>}]} {
    %c0 = arith.constant 0 : index
    %c0_0 = arith.constant 0 : index
    %c0_1 = arith.constant 0 : index
    %0 = vector.load %arg2[%c0, %c0_0, %c0_1] : memref<1x16x128xbf16, #tpu.memory_space<vmem>>, vector<1x16x128xbf16>
    %1 = vector.shape_cast %0 : vector<1x16x128xbf16> to vector<16x128xbf16>
    %c0_2 = arith.constant 0 : index
    %c0_3 = arith.constant 0 : index
    %c0_4 = arith.constant 0 : index
    %2 = vector.load %arg3[%c0_2, %c0_3, %c0_4] : memref<1x32x128xbf16, #tpu.memory_space<vmem>>, vector<1x32x128xbf16>
    %3 = vector.shape_cast %2 : vector<1x32x128xbf16> to vector<32x128xbf16>
    %c0_5 = arith.constant 0 : index
    %c0_6 = arith.constant 0 : index
    %c0_7 = arith.constant 0 : index
    %4 = vector.load %arg4[%c0_5, %c0_6, %c0_7] : memref<1x16x128xbf16, #tpu.memory_space<vmem>>, vector<1x16x128xbf16>
    %5 = vector.shape_cast %4 : vector<1x16x128xbf16> to vector<16x128xbf16>
    %6 = tpu.concatenate %1, %3, %5 in 0 : vector<16x128xbf16>, vector<32x128xbf16>, vector<16x128xbf16> -> vector<64x128xbf16>
    %c32_i32 = arith.constant 32 : i32
    %7 = arith.muli %arg0, %c32_i32 : i32
    %c16_i32 = arith.constant 16 : i32
    %8 = arith.subi %7, %c16_i32 : i32
    %9 = tpu.iota {dimensions = array<i32: 0>} : vector<64x1xi32>
    %10 = vector.broadcast %8 : i32 to vector<64x1xi32>
    %11 = arith.addi %10, %9 : vector<64x1xi32>
    %c0_i32 = arith.constant 0 : i32
    %12 = vector.broadcast %c0_i32 : i32 to vector<64x1xi32>
    %13 = arith.cmpi sge, %11, %12 : vector<64x1xi32>
    %c16_i32_8 = arith.constant 16 : i32
    %14 = vector.broadcast %c16_i32_8 : i32 to vector<64x1xi32>
    %15 = arith.cmpi slt, %11, %14 : vector<64x1xi32>
    %16 = arith.andi %13, %15 : vector<64x1xi1>
    %17 = arith.extf %6 : vector<64x128xbf16> to vector<64x128xf32>
    %c0_9 = arith.constant 0 : index
    %c0_10 = arith.constant 0 : index
    %18 = vector.load %arg5[%c0_9, %c0_10] : memref<1x128xf32, #tpu.memory_space<vmem>>, vector<1x128xf32>
    %19 = vector.broadcast %18 : vector<1x128xf32> to vector<64x128xf32>
    %20 = arith.mulf %17, %19 : vector<64x128xf32>
    %c0_11 = arith.constant 0 : index
    %c0_12 = arith.constant 0 : index
    %21 = vector.load %arg6[%c0_11, %c0_12] : memref<1x128xf32, #tpu.memory_space<vmem>>, vector<1x128xf32>
    %22 = vector.broadcast %21 : vector<1x128xf32> to vector<64x128xf32>
    %23 = arith.addf %20, %22 : vector<64x128xf32>
    %cst = arith.constant 5.000000e-01 : f32
    %24 = vector.broadcast %cst : f32 to vector<64x128xf32>
    %25 = arith.mulf %24, %23 : vector<64x128xf32>
    %cst_13 = arith.constant 4.471500e-02 : f32
    %26 = vector.broadcast %cst_13 : f32 to vector<64x128xf32>
    %27 = arith.mulf %26, %23 : vector<64x128xf32>
    %28 = arith.mulf %27, %23 : vector<64x128xf32>
    %29 = arith.mulf %28, %23 : vector<64x128xf32>
    %30 = arith.addf %23, %29 : vector<64x128xf32>
    %cst_14 = arith.constant 0.797884583 : f32
    %31 = vector.broadcast %cst_14 : f32 to vector<64x128xf32>
    %32 = arith.mulf %31, %30 : vector<64x128xf32>
    %33 = math.tanh %32 : vector<64x128xf32>
    %cst_15 = arith.constant 1.000000e+00 : f32
    %34 = vector.broadcast %cst_15 : f32 to vector<64x128xf32>
    %35 = arith.addf %34, %33 : vector<64x128xf32>
    %36 = arith.mulf %25, %35 : vector<64x128xf32>
    %cst_16 = arith.constant 0.000000e+00 : f32
    %37 = vector.shape_cast %16 : vector<64x1xi1> to vector<64x1xi1>
    %38 = vector.broadcast %37 : vector<64x1xi1> to vector<64x128xi1>
    %39 = vector.broadcast %cst_16 : f32 to vector<64x128xf32>
    %40 = arith.select %38, %36, %39 : vector<64x128xi1>, vector<64x128xf32>
    %41 = arith.truncf %40 : vector<64x128xf32> to vector<64x128xbf16>
    %42 = vector.extract_strided_slice %41 {offsets = [14, 0], sizes = [32, 128], strides = [1, 1]} : vector<64x128xbf16> to vector<32x128xbf16>
    %c0_17 = arith.constant 0 : index
    %c0_18 = arith.constant 0 : index
    %c0_19 = arith.constant 0 : index
    %43 = vector.load %arg7[%c0_17, %c0_18, %c0_19] : memref<4x128x128xbf16, #tpu.memory_space<vmem>>, vector<1x128x128xbf16>
    %44 = vector.shape_cast %43 : vector<1x128x128xbf16> to vector<128x128xbf16>
    %cst_20 = arith.constant dense<0.000000e+00> : vector<32x128xf32>
    %45 = tpu.matmul %42, %44, %cst_20 {dimension_numbers = #tpu.dot_dimension_numbers<[1], [0], [0], [1], [0, 0, 1, 1], [], []>} : vector<32x128xbf16>, vector<128x128xbf16>, vector<32x128xf32> -> vector<32x128xf32>
    %46 = vector.extract_strided_slice %41 {offsets = [15, 0], sizes = [32, 128], strides = [1, 1]} : vector<64x128xbf16> to vector<32x128xbf16>
    %c1 = arith.constant 1 : index
    %c0_21 = arith.constant 0 : index
    %c0_22 = arith.constant 0 : index
    %47 = vector.load %arg7[%c1, %c0_21, %c0_22] : memref<4x128x128xbf16, #tpu.memory_space<vmem>>, vector<1x128x128xbf16>
    %48 = vector.shape_cast %47 : vector<1x128x128xbf16> to vector<128x128xbf16>
    %cst_23 = arith.constant dense<0.000000e+00> : vector<32x128xf32>
    %49 = tpu.matmul %46, %48, %cst_23 {dimension_numbers = #tpu.dot_dimension_numbers<[1], [0], [0], [1], [0, 0, 1, 1], [], []>} : vector<32x128xbf16>, vector<128x128xbf16>, vector<32x128xf32> -> vector<32x128xf32>
    %50 = arith.addf %45, %49 : vector<32x128xf32>
    %51 = vector.extract_strided_slice %41 {offsets = [16, 0], sizes = [32, 128], strides = [1, 1]} : vector<64x128xbf16> to vector<32x128xbf16>
    %c2 = arith.constant 2 : index
    %c0_24 = arith.constant 0 : index
    %c0_25 = arith.constant 0 : index
    %52 = vector.load %arg7[%c2, %c0_24, %c0_25] : memref<4x128x128xbf16, #tpu.memory_space<vmem>>, vector<1x128x128xbf16>
    %53 = vector.shape_cast %52 : vector<1x128x128xbf16> to vector<128x128xbf16>
    %cst_26 = arith.constant dense<0.000000e+00> : vector<32x128xf32>
    %54 = tpu.matmul %51, %53, %cst_26 {dimension_numbers = #tpu.dot_dimension_numbers<[1], [0], [0], [1], [0, 0, 1, 1], [], []>} : vector<32x128xbf16>, vector<128x128xbf16>, vector<32x128xf32> -> vector<32x128xf32>
    %55 = arith.addf %50, %54 : vector<32x128xf32>
    %56 = vector.extract_strided_slice %41 {offsets = [17, 0], sizes = [32, 128], strides = [1, 1]} : vector<64x128xbf16> to vector<32x128xbf16>
    %c3 = arith.constant 3 : index
    %c0_27 = arith.constant 0 : index
    %c0_28 = arith.constant 0 : index
    %57 = vector.load %arg7[%c3, %c0_27, %c0_28] : memref<4x128x128xbf16, #tpu.memory_space<vmem>>, vector<1x128x128xbf16>
    %58 = vector.shape_cast %57 : vector<1x128x128xbf16> to vector<128x128xbf16>
    %cst_29 = arith.constant dense<0.000000e+00> : vector<32x128xf32>
    %59 = tpu.matmul %56, %58, %cst_29 {dimension_numbers = #tpu.dot_dimension_numbers<[1], [0], [0], [1], [0, 0, 1, 1], [], []>} : vector<32x128xbf16>, vector<128x128xbf16>, vector<32x128xf32> -> vector<32x128xf32>
    %60 = arith.addf %55, %59 : vector<32x128xf32>
    %c0_30 = arith.constant 0 : index
    %c0_31 = arith.constant 0 : index
    %61 = vector.load %arg8[%c0_30, %c0_31] : memref<1x128xf32, #tpu.memory_space<vmem>>, vector<1x128xf32>
    %62 = vector.broadcast %61 : vector<1x128xf32> to vector<32x128xf32>
    %63 = arith.addf %60, %62 : vector<32x128xf32>
    %64 = arith.truncf %63 : vector<32x128xf32> to vector<32x128xbf16>
    %c0_32 = arith.constant 0 : index
    %c0_33 = arith.constant 0 : index
    %c0_34 = arith.constant 0 : index
    %65 = vector.load %arg9[%c0_32, %c0_33, %c0_34] : memref<1x32x128xbf16, #tpu.memory_space<vmem>>, vector<1x32x128xbf16>
    %66 = vector.shape_cast %65 : vector<1x32x128xbf16> to vector<32x128xbf16>
    %67 = vector.shape_cast %64 : vector<32x128xbf16> to vector<1x32x128xbf16>
    tpu.vector_store %arg9[%c0_32, %c0_33, %c0_34], %67 {strides = array<i32>} : memref<1x32x128xbf16, #tpu.memory_space<vmem>>, vector<1x32x128xbf16>,
    %c32_i32_35 = arith.constant 32 : i32
    %68 = arith.muli %arg0, %c32_i32_35 : i32
    %69 = tpu.iota {dimensions = array<i32: 0>} : vector<32x1xi32>
    %70 = vector.broadcast %68 : i32 to vector<32x1xi32>
    %71 = arith.addi %70, %69 : vector<32x1xi32>
    %c17_i32 = arith.constant 17 : i32
    %72 = vector.broadcast %c17_i32 : i32 to vector<32x1xi32>
    %73 = arith.cmpi slt, %71, %72 : vector<32x1xi32>
    %cst_36 = arith.constant 0.000000e+00 : f32
    %74 = vector.shape_cast %73 : vector<32x1xi1> to vector<32x1xi1>
    %75 = vector.broadcast %74 : vector<32x1xi1> to vector<32x128xi1>
    %76 = vector.broadcast %cst_36 : f32 to vector<32x128xf32>
    %77 = arith.select %75, %63, %76 : vector<32x128xi1>, vector<32x128xf32>
    %cst_37 = arith.constant dense<0.000000e+00> : vector<128xf32>
    %78 = vector.multi_reduction <add>, %77, %cst_37 [0] : vector<32x128xf32> to vector<128xf32>
    %79 = vector.shape_cast %78 : vector<128xf32> to vector<1x128xf32>
    %80 = arith.mulf %77, %77 : vector<32x128xf32>
    %cst_38 = arith.constant dense<0.000000e+00> : vector<128xf32>
    %81 = vector.multi_reduction <add>, %80, %cst_38 [0] : vector<32x128xf32> to vector<128xf32>
    %82 = vector.shape_cast %81 : vector<128xf32> to vector<1x128xf32>
    %cst_39 = arith.constant 0.000000e+00 : f32
    %83 = vector.broadcast %cst_39 : f32 to vector<6x128xf32>
    %84 = tpu.concatenate %79, %82, %83 in 0 : vector<1x128xf32>, vector<1x128xf32>, vector<6x128xf32> -> vector<8x128xf32>
    %c0_40 = arith.constant 0 : index
    %c0_41 = arith.constant 0 : index
    %c0_42 = arith.constant 0 : index
    %c0_43 = arith.constant 0 : index
    %85 = vector.load %arg10[%c0_40, %c0_41, %c0_42, %c0_43] : memref<1x1x8x128xf32, #tpu.memory_space<vmem>>, vector<1x1x8x128xf32>
    %86 = vector.shape_cast %85 : vector<1x1x8x128xf32> to vector<8x128xf32>
    %87 = vector.shape_cast %84 : vector<8x128xf32> to vector<1x1x8x128xf32>
    tpu.vector_store %arg10[%c0_40, %c0_41, %c0_42, %c0_43], %87 {strides = array<i32>} : memref<1x1x8x128xf32, #tpu.memory_space<vmem>>, vector<1x1x8x128xf32>,
    return
  }
  func.func @transform_0(%arg0: i32, %arg1: i32) -> (i32, i32, i32) {
    %c2_i32 = arith.constant 2 : i32
    %0 = arith.muli %arg0, %c2_i32 : i32
    %c1_i32 = arith.constant 1 : i32
    %1 = arith.subi %0, %c1_i32 : i32
    %c0_i32 = arith.constant 0 : i32
    %2 = arith.maxsi %1, %c0_i32 : i32
    %c0_i32_0 = arith.constant 0 : i32
    %c0_i32_1 = arith.constant 0 : i32
    return %arg1, %2, %c0_i32_0 : i32, i32, i32
  }
  func.func @transform_1(%arg0: i32, %arg1: i32) -> (i32, i32, i32) {
    %c0_i32 = arith.constant 0 : i32
    %c0_i32_0 = arith.constant 0 : i32
    return %arg1, %arg0, %c0_i32 : i32, i32, i32
  }
  func.func @transform_2(%arg0: i32, %arg1: i32) -> (i32, i32, i32) {
    %c1_i32 = arith.constant 1 : i32
    %0 = arith.addi %arg0, %c1_i32 : i32
    %c2_i32 = arith.constant 2 : i32
    %1 = arith.muli %0, %c2_i32 : i32
    %c1_i32_0 = arith.constant 1 : i32
    %2 = arith.minsi %1, %c1_i32_0 : i32
    %c0_i32 = arith.constant 0 : i32
    %c0_i32_1 = arith.constant 0 : i32
    return %arg1, %2, %c0_i32 : i32, i32, i32
  }
  func.func @transform_3(%arg0: i32, %arg1: i32) -> (i32, i32) {
    %c0_i32 = arith.constant 0 : i32
    %c0_i32_0 = arith.constant 0 : i32
    %c0_i32_1 = arith.constant 0 : i32
    return %c0_i32, %c0_i32_0 : i32, i32
  }
  func.func @transform_4(%arg0: i32, %arg1: i32) -> (i32, i32) {
    %c0_i32 = arith.constant 0 : i32
    %c0_i32_0 = arith.constant 0 : i32
    %c0_i32_1 = arith.constant 0 : i32
    return %c0_i32, %c0_i32_0 : i32, i32
  }
  func.func @transform_5(%arg0: i32, %arg1: i32) -> (i32, i32, i32) {
    %c0_i32 = arith.constant 0 : i32
    %c0_i32_0 = arith.constant 0 : i32
    %c0_i32_1 = arith.constant 0 : i32
    %c0_i32_2 = arith.constant 0 : i32
    return %c0_i32, %c0_i32_0, %c0_i32_1 : i32, i32, i32
  }
  func.func @transform_6(%arg0: i32, %arg1: i32) -> (i32, i32) {
    %c0_i32 = arith.constant 0 : i32
    %c0_i32_0 = arith.constant 0 : i32
    %c0_i32_1 = arith.constant 0 : i32
    return %c0_i32, %c0_i32_0 : i32, i32
  }
  func.func @transform_7(%arg0: i32, %arg1: i32) -> (i32, i32, i32) {
    %c0_i32 = arith.constant 0 : i32
    %c0_i32_0 = arith.constant 0 : i32
    return %arg1, %arg0, %c0_i32 : i32, i32, i32
  }
  func.func @transform_8(%arg0: i32, %arg1: i32) -> (i32, i32, i32, i32) {
    %c0_i32 = arith.constant 0 : i32
    %c0_i32_0 = arith.constant 0 : i32
    %c0_i32_1 = arith.constant 0 : i32
    return %arg1, %arg0, %c0_i32, %c0_i32_0 : i32, i32, i32, i32
  }
}

module attributes {stable_mosaic.version = 11 : i64} {
  func.func @_norm_res_kernel(%arg0: i32, %arg1: i32, %arg2: memref<1x32x128xbf16, #tpu.memory_space<vmem>>, %arg3: memref<1x128xf32, #tpu.memory_space<vmem>>, %arg4: memref<1x128xf32, #tpu.memory_space<vmem>>, %arg5: memref<1x32x128xbf16, #tpu.memory_space<vmem>>, %arg6: memref<1x32x128xbf16, #tpu.memory_space<vmem>>) attributes {dimension_semantics = [#tpu.dimension_semantics<parallel>, #tpu.dimension_semantics<parallel>], iteration_bounds = array<i64: 1, 2>, scalar_prefetch = 0 : i64, scratch_operands = 0 : i64, tpu.core_type = #tpu.core_type<tc>, window_params = [{transform_indices = @transform_0, window_bounds = array<i64: 1, 32, 128>}, {pipeline_mode = #tpu.pipeline_mode<synchronous>, transform_indices = @transform_1, window_bounds = array<i64: 1, 128>}, {pipeline_mode = #tpu.pipeline_mode<synchronous>, transform_indices = @transform_2, window_bounds = array<i64: 1, 128>}, {transform_indices = @transform_3, window_bounds = array<i64: 1, 32, 128>}, {transform_indices = @transform_4, window_bounds = array<i64: 1, 32, 128>}]} {
    %c0 = arith.constant 0 : index
    %c0_0 = arith.constant 0 : index
    %c0_1 = arith.constant 0 : index
    %0 = vector.load %arg2[%c0, %c0_0, %c0_1] : memref<1x32x128xbf16, #tpu.memory_space<vmem>>, vector<1x32x128xbf16>
    %1 = vector.shape_cast %0 : vector<1x32x128xbf16> to vector<32x128xbf16>
    %2 = arith.extf %1 : vector<32x128xbf16> to vector<32x128xf32>
    %c0_2 = arith.constant 0 : index
    %c0_3 = arith.constant 0 : index
    %3 = vector.load %arg3[%c0_2, %c0_3] : memref<1x128xf32, #tpu.memory_space<vmem>>, vector<1x128xf32>
    %4 = vector.broadcast %3 : vector<1x128xf32> to vector<32x128xf32>
    %5 = arith.mulf %2, %4 : vector<32x128xf32>
    %c0_4 = arith.constant 0 : index
    %c0_5 = arith.constant 0 : index
    %6 = vector.load %arg4[%c0_4, %c0_5] : memref<1x128xf32, #tpu.memory_space<vmem>>, vector<1x128xf32>
    %7 = vector.broadcast %6 : vector<1x128xf32> to vector<32x128xf32>
    %8 = arith.addf %5, %7 : vector<32x128xf32>
    %cst = arith.constant 5.000000e-01 : f32
    %9 = vector.broadcast %cst : f32 to vector<32x128xf32>
    %10 = arith.mulf %9, %8 : vector<32x128xf32>
    %cst_6 = arith.constant 4.471500e-02 : f32
    %11 = vector.broadcast %cst_6 : f32 to vector<32x128xf32>
    %12 = arith.mulf %11, %8 : vector<32x128xf32>
    %13 = arith.mulf %12, %8 : vector<32x128xf32>
    %14 = arith.mulf %13, %8 : vector<32x128xf32>
    %15 = arith.addf %8, %14 : vector<32x128xf32>
    %cst_7 = arith.constant 0.797884583 : f32
    %16 = vector.broadcast %cst_7 : f32 to vector<32x128xf32>
    %17 = arith.mulf %16, %15 : vector<32x128xf32>
    %18 = math.tanh %17 : vector<32x128xf32>
    %cst_8 = arith.constant 1.000000e+00 : f32
    %19 = vector.broadcast %cst_8 : f32 to vector<32x128xf32>
    %20 = arith.addf %19, %18 : vector<32x128xf32>
    %21 = arith.mulf %10, %20 : vector<32x128xf32>
    %c0_9 = arith.constant 0 : index
    %c0_10 = arith.constant 0 : index
    %c0_11 = arith.constant 0 : index
    %22 = vector.load %arg5[%c0_9, %c0_10, %c0_11] : memref<1x32x128xbf16, #tpu.memory_space<vmem>>, vector<1x32x128xbf16>
    %23 = vector.shape_cast %22 : vector<1x32x128xbf16> to vector<32x128xbf16>
    %24 = arith.extf %23 : vector<32x128xbf16> to vector<32x128xf32>
    %25 = arith.addf %21, %24 : vector<32x128xf32>
    %c32_i32 = arith.constant 32 : i32
    %26 = arith.muli %arg0, %c32_i32 : i32
    %27 = tpu.iota {dimensions = array<i32: 0>} : vector<32x1xi32>
    %28 = vector.broadcast %26 : i32 to vector<32x1xi32>
    %29 = arith.addi %28, %27 : vector<32x1xi32>
    %c16_i32 = arith.constant 16 : i32
    %30 = vector.broadcast %c16_i32 : i32 to vector<32x1xi32>
    %31 = arith.cmpi slt, %29, %30 : vector<32x1xi32>
    %cst_12 = arith.constant 0.000000e+00 : f32
    %32 = vector.shape_cast %31 : vector<32x1xi1> to vector<32x1xi1>
    %33 = vector.broadcast %32 : vector<32x1xi1> to vector<32x128xi1>
    %34 = vector.broadcast %cst_12 : f32 to vector<32x128xf32>
    %35 = arith.select %33, %25, %34 : vector<32x128xi1>, vector<32x128xf32>
    %36 = arith.truncf %35 : vector<32x128xf32> to vector<32x128xbf16>
    %c0_13 = arith.constant 0 : index
    %c0_14 = arith.constant 0 : index
    %c0_15 = arith.constant 0 : index
    %37 = vector.load %arg6[%c0_13, %c0_14, %c0_15] : memref<1x32x128xbf16, #tpu.memory_space<vmem>>, vector<1x32x128xbf16>
    %38 = vector.shape_cast %37 : vector<1x32x128xbf16> to vector<32x128xbf16>
    %39 = vector.shape_cast %36 : vector<32x128xbf16> to vector<1x32x128xbf16>
    tpu.vector_store %arg6[%c0_13, %c0_14, %c0_15], %39 {strides = array<i32>} : memref<1x32x128xbf16, #tpu.memory_space<vmem>>, vector<1x32x128xbf16>,
    return
  }
  func.func @transform_0(%arg0: i32, %arg1: i32) -> (i32, i32, i32) {
    %c0_i32 = arith.constant 0 : i32
    %c0_i32_0 = arith.constant 0 : i32
    return %arg1, %arg0, %c0_i32 : i32, i32, i32
  }
  func.func @transform_1(%arg0: i32, %arg1: i32) -> (i32, i32) {
    %c0_i32 = arith.constant 0 : i32
    %c0_i32_0 = arith.constant 0 : i32
    %c0_i32_1 = arith.constant 0 : i32
    return %c0_i32, %c0_i32_0 : i32, i32
  }
  func.func @transform_2(%arg0: i32, %arg1: i32) -> (i32, i32) {
    %c0_i32 = arith.constant 0 : i32
    %c0_i32_0 = arith.constant 0 : i32
    %c0_i32_1 = arith.constant 0 : i32
    return %c0_i32, %c0_i32_0 : i32, i32
  }
  func.func @transform_3(%arg0: i32, %arg1: i32) -> (i32, i32, i32) {
    %c0_i32 = arith.constant 0 : i32
    %c0_i32_0 = arith.constant 0 : i32
    return %arg1, %arg0, %c0_i32 : i32, i32, i32
  }
  func.func @transform_4(%arg0: i32, %arg1: i32) -> (i32, i32, i32) {
    %c0_i32 = arith.constant 0 : i32
    %c0_i32_0 = arith.constant 0 : i32
    return %arg1, %arg0, %c0_i32 : i32, i32, i32
  }
}

module attributes {stable_mosaic.version = 11 : i64} {
  func.func @_conv_kernel(%arg0: i32, %arg1: i32, %arg2: memref<1x16x128xbf16, #tpu.memory_space<vmem>>, %arg3: memref<1x32x128xbf16, #tpu.memory_space<vmem>>, %arg4: memref<1x16x128xbf16, #tpu.memory_space<vmem>>, %arg5: memref<4x128x128xbf16, #tpu.memory_space<vmem>>, %arg6: memref<1x128xf32, #tpu.memory_space<vmem>>, %arg7: memref<1x32x128xbf16, #tpu.memory_space<vmem>>, %arg8: memref<1x1x8x128xf32, #tpu.memory_space<vmem>>) attributes {dimension_semantics = [#tpu.dimension_semantics<parallel>, #tpu.dimension_semantics<parallel>], iteration_bounds = array<i64: 1, 2>, scalar_prefetch = 0 : i64, scratch_operands = 0 : i64, tpu.core_type = #tpu.core_type<tc>, window_params = [{transform_indices = @transform_0, window_bounds = array<i64: 1, 16, 128>}, {transform_indices = @transform_1, window_bounds = array<i64: 1, 32, 128>}, {transform_indices = @transform_2, window_bounds = array<i64: 1, 16, 128>}, {pipeline_mode = #tpu.pipeline_mode<synchronous>, transform_indices = @transform_3, window_bounds = array<i64: 4, 128, 128>}, {pipeline_mode = #tpu.pipeline_mode<synchronous>, transform_indices = @transform_4, window_bounds = array<i64: 1, 128>}, {transform_indices = @transform_5, window_bounds = array<i64: 1, 32, 128>}, {transform_indices = @transform_6, window_bounds = array<i64: 1, 1, 8, 128>}]} {
    %c0 = arith.constant 0 : index
    %c0_0 = arith.constant 0 : index
    %c0_1 = arith.constant 0 : index
    %0 = vector.load %arg2[%c0, %c0_0, %c0_1] : memref<1x16x128xbf16, #tpu.memory_space<vmem>>, vector<1x16x128xbf16>
    %1 = vector.shape_cast %0 : vector<1x16x128xbf16> to vector<16x128xbf16>
    %c0_2 = arith.constant 0 : index
    %c0_3 = arith.constant 0 : index
    %c0_4 = arith.constant 0 : index
    %2 = vector.load %arg3[%c0_2, %c0_3, %c0_4] : memref<1x32x128xbf16, #tpu.memory_space<vmem>>, vector<1x32x128xbf16>
    %3 = vector.shape_cast %2 : vector<1x32x128xbf16> to vector<32x128xbf16>
    %c0_5 = arith.constant 0 : index
    %c0_6 = arith.constant 0 : index
    %c0_7 = arith.constant 0 : index
    %4 = vector.load %arg4[%c0_5, %c0_6, %c0_7] : memref<1x16x128xbf16, #tpu.memory_space<vmem>>, vector<1x16x128xbf16>
    %5 = vector.shape_cast %4 : vector<1x16x128xbf16> to vector<16x128xbf16>
    %6 = tpu.concatenate %1, %3, %5 in 0 : vector<16x128xbf16>, vector<32x128xbf16>, vector<16x128xbf16> -> vector<64x128xbf16>
    %c32_i32 = arith.constant 32 : i32
    %7 = arith.muli %arg0, %c32_i32 : i32
    %c16_i32 = arith.constant 16 : i32
    %8 = arith.subi %7, %c16_i32 : i32
    %9 = tpu.iota {dimensions = array<i32: 0>} : vector<64x1xi32>
    %10 = vector.broadcast %8 : i32 to vector<64x1xi32>
    %11 = arith.addi %10, %9 : vector<64x1xi32>
    %c0_i32 = arith.constant 0 : i32
    %12 = vector.broadcast %c0_i32 : i32 to vector<64x1xi32>
    %13 = arith.cmpi sge, %11, %12 : vector<64x1xi32>
    %c16_i32_8 = arith.constant 16 : i32
    %14 = vector.broadcast %c16_i32_8 : i32 to vector<64x1xi32>
    %15 = arith.cmpi slt, %11, %14 : vector<64x1xi32>
    %16 = arith.andi %13, %15 : vector<64x1xi1>
    %cst = arith.constant 0.000000e+00 : bf16
    %17 = vector.broadcast %cst : bf16 to vector<64x128xbf16>
    %18 = vector.shape_cast %16 : vector<64x1xi1> to vector<64x1xi1>
    %19 = vector.broadcast %18 : vector<64x1xi1> to vector<64x128xi1>
    %20 = arith.select %19, %6, %17 : vector<64x128xi1>, vector<64x128xbf16>
    %21 = vector.extract_strided_slice %20 {offsets = [13, 0], sizes = [32, 128], strides = [1, 1]} : vector<64x128xbf16> to vector<32x128xbf16>
    %c0_9 = arith.constant 0 : index
    %c0_10 = arith.constant 0 : index
    %c0_11 = arith.constant 0 : index
    %22 = vector.load %arg5[%c0_9, %c0_10, %c0_11] : memref<4x128x128xbf16, #tpu.memory_space<vmem>>, vector<1x128x128xbf16>
    %23 = vector.shape_cast %22 : vector<1x128x128xbf16> to vector<128x128xbf16>
    %cst_12 = arith.constant dense<0.000000e+00> : vector<32x128xf32>
    %24 = tpu.matmul %21, %23, %cst_12 {dimension_numbers = #tpu.dot_dimension_numbers<[1], [0], [0], [1], [0, 0, 1, 1], [], []>} : vector<32x128xbf16>, vector<128x128xbf16>, vector<32x128xf32> -> vector<32x128xf32>
    %25 = vector.extract_strided_slice %20 {offsets = [15, 0], sizes = [32, 128], strides = [1, 1]} : vector<64x128xbf16> to vector<32x128xbf16>
    %c1 = arith.constant 1 : index
    %c0_13 = arith.constant 0 : index
    %c0_14 = arith.constant 0 : index
    %26 = vector.load %arg5[%c1, %c0_13, %c0_14] : memref<4x128x128xbf16, #tpu.memory_space<vmem>>, vector<1x128x128xbf16>
    %27 = vector.shape_cast %26 : vector<1x128x128xbf16> to vector<128x128xbf16>
    %cst_15 = arith.constant dense<0.000000e+00> : vector<32x128xf32>
    %28 = tpu.matmul %25, %27, %cst_15 {dimension_numbers = #tpu.dot_dimension_numbers<[1], [0], [0], [1], [0, 0, 1, 1], [], []>} : vector<32x128xbf16>, vector<128x128xbf16>, vector<32x128xf32> -> vector<32x128xf32>
    %29 = arith.addf %24, %28 : vector<32x128xf32>
    %30 = vector.extract_strided_slice %20 {offsets = [17, 0], sizes = [32, 128], strides = [1, 1]} : vector<64x128xbf16> to vector<32x128xbf16>
    %c2 = arith.constant 2 : index
    %c0_16 = arith.constant 0 : index
    %c0_17 = arith.constant 0 : index
    %31 = vector.load %arg5[%c2, %c0_16, %c0_17] : memref<4x128x128xbf16, #tpu.memory_space<vmem>>, vector<1x128x128xbf16>
    %32 = vector.shape_cast %31 : vector<1x128x128xbf16> to vector<128x128xbf16>
    %cst_18 = arith.constant dense<0.000000e+00> : vector<32x128xf32>
    %33 = tpu.matmul %30, %32, %cst_18 {dimension_numbers = #tpu.dot_dimension_numbers<[1], [0], [0], [1], [0, 0, 1, 1], [], []>} : vector<32x128xbf16>, vector<128x128xbf16>, vector<32x128xf32> -> vector<32x128xf32>
    %34 = arith.addf %29, %33 : vector<32x128xf32>
    %35 = vector.extract_strided_slice %20 {offsets = [19, 0], sizes = [32, 128], strides = [1, 1]} : vector<64x128xbf16> to vector<32x128xbf16>
    %c3 = arith.constant 3 : index
    %c0_19 = arith.constant 0 : index
    %c0_20 = arith.constant 0 : index
    %36 = vector.load %arg5[%c3, %c0_19, %c0_20] : memref<4x128x128xbf16, #tpu.memory_space<vmem>>, vector<1x128x128xbf16>
    %37 = vector.shape_cast %36 : vector<1x128x128xbf16> to vector<128x128xbf16>
    %cst_21 = arith.constant dense<0.000000e+00> : vector<32x128xf32>
    %38 = tpu.matmul %35, %37, %cst_21 {dimension_numbers = #tpu.dot_dimension_numbers<[1], [0], [0], [1], [0, 0, 1, 1], [], []>} : vector<32x128xbf16>, vector<128x128xbf16>, vector<32x128xf32> -> vector<32x128xf32>
    %39 = arith.addf %34, %38 : vector<32x128xf32>
    %c0_22 = arith.constant 0 : index
    %c0_23 = arith.constant 0 : index
    %40 = vector.load %arg6[%c0_22, %c0_23] : memref<1x128xf32, #tpu.memory_space<vmem>>, vector<1x128xf32>
    %41 = vector.broadcast %40 : vector<1x128xf32> to vector<32x128xf32>
    %42 = arith.addf %39, %41 : vector<32x128xf32>
    %43 = arith.truncf %42 : vector<32x128xf32> to vector<32x128xbf16>
    %c0_24 = arith.constant 0 : index
    %c0_25 = arith.constant 0 : index
    %c0_26 = arith.constant 0 : index
    %44 = vector.load %arg7[%c0_24, %c0_25, %c0_26] : memref<1x32x128xbf16, #tpu.memory_space<vmem>>, vector<1x32x128xbf16>
    %45 = vector.shape_cast %44 : vector<1x32x128xbf16> to vector<32x128xbf16>
    %46 = vector.shape_cast %43 : vector<32x128xbf16> to vector<1x32x128xbf16>
    tpu.vector_store %arg7[%c0_24, %c0_25, %c0_26], %46 {strides = array<i32>} : memref<1x32x128xbf16, #tpu.memory_space<vmem>>, vector<1x32x128xbf16>,
    %c32_i32_27 = arith.constant 32 : i32
    %47 = arith.muli %arg0, %c32_i32_27 : i32
    %48 = tpu.iota {dimensions = array<i32: 0>} : vector<32x1xi32>
    %49 = vector.broadcast %47 : i32 to vector<32x1xi32>
    %50 = arith.addi %49, %48 : vector<32x1xi32>
    %c16_i32_28 = arith.constant 16 : i32
    %51 = vector.broadcast %c16_i32_28 : i32 to vector<32x1xi32>
    %52 = arith.cmpi slt, %50, %51 : vector<32x1xi32>
    %cst_29 = arith.constant 0.000000e+00 : f32
    %53 = vector.shape_cast %52 : vector<32x1xi1> to vector<32x1xi1>
    %54 = vector.broadcast %53 : vector<32x1xi1> to vector<32x128xi1>
    %55 = vector.broadcast %cst_29 : f32 to vector<32x128xf32>
    %56 = arith.select %54, %42, %55 : vector<32x128xi1>, vector<32x128xf32>
    %cst_30 = arith.constant dense<0.000000e+00> : vector<128xf32>
    %57 = vector.multi_reduction <add>, %56, %cst_30 [0] : vector<32x128xf32> to vector<128xf32>
    %58 = vector.shape_cast %57 : vector<128xf32> to vector<1x128xf32>
    %59 = arith.mulf %56, %56 : vector<32x128xf32>
    %cst_31 = arith.constant dense<0.000000e+00> : vector<128xf32>
    %60 = vector.multi_reduction <add>, %59, %cst_31 [0] : vector<32x128xf32> to vector<128xf32>
    %61 = vector.shape_cast %60 : vector<128xf32> to vector<1x128xf32>
    %cst_32 = arith.constant 0.000000e+00 : f32
    %62 = vector.broadcast %cst_32 : f32 to vector<6x128xf32>
    %63 = tpu.concatenate %58, %61, %62 in 0 : vector<1x128xf32>, vector<1x128xf32>, vector<6x128xf32> -> vector<8x128xf32>
    %c0_33 = arith.constant 0 : index
    %c0_34 = arith.constant 0 : index
    %c0_35 = arith.constant 0 : index
    %c0_36 = arith.constant 0 : index
    %64 = vector.load %arg8[%c0_33, %c0_34, %c0_35, %c0_36] : memref<1x1x8x128xf32, #tpu.memory_space<vmem>>, vector<1x1x8x128xf32>
    %65 = vector.shape_cast %64 : vector<1x1x8x128xf32> to vector<8x128xf32>
    %66 = vector.shape_cast %63 : vector<8x128xf32> to vector<1x1x8x128xf32>
    tpu.vector_store %arg8[%c0_33, %c0_34, %c0_35, %c0_36], %66 {strides = array<i32>} : memref<1x1x8x128xf32, #tpu.memory_space<vmem>>, vector<1x1x8x128xf32>,
    return
  }
  func.func @transform_0(%arg0: i32, %arg1: i32) -> (i32, i32, i32) {
    %c2_i32 = arith.constant 2 : i32
    %0 = arith.muli %arg0, %c2_i32 : i32
    %c1_i32 = arith.constant 1 : i32
    %1 = arith.subi %0, %c1_i32 : i32
    %c0_i32 = arith.constant 0 : i32
    %2 = arith.maxsi %1, %c0_i32 : i32
    %c0_i32_0 = arith.constant 0 : i32
    %c0_i32_1 = arith.constant 0 : i32
    return %arg1, %2, %c0_i32_0 : i32, i32, i32
  }
  func.func @transform_1(%arg0: i32, %arg1: i32) -> (i32, i32, i32) {
    %c0_i32 = arith.constant 0 : i32
    %c0_i32_0 = arith.constant 0 : i32
    return %arg1, %arg0, %c0_i32 : i32, i32, i32
  }
  func.func @transform_2(%arg0: i32, %arg1: i32) -> (i32, i32, i32) {
    %c1_i32 = arith.constant 1 : i32
    %0 = arith.addi %arg0, %c1_i32 : i32
    %c2_i32 = arith.constant 2 : i32
    %1 = arith.muli %0, %c2_i32 : i32
    %c1_i32_0 = arith.constant 1 : i32
    %2 = arith.minsi %1, %c1_i32_0 : i32
    %c0_i32 = arith.constant 0 : i32
    %c0_i32_1 = arith.constant 0 : i32
    return %arg1, %2, %c0_i32 : i32, i32, i32
  }
  func.func @transform_3(%arg0: i32, %arg1: i32) -> (i32, i32, i32) {
    %c0_i32 = arith.constant 0 : i32
    %c0_i32_0 = arith.constant 0 : i32
    %c0_i32_1 = arith.constant 0 : i32
    %c0_i32_2 = arith.constant 0 : i32
    return %c0_i32, %c0_i32_0, %c0_i32_1 : i32, i32, i32
  }
  func.func @transform_4(%arg0: i32, %arg1: i32) -> (i32, i32) {
    %c0_i32 = arith.constant 0 : i32
    %c0_i32_0 = arith.constant 0 : i32
    %c0_i32_1 = arith.constant 0 : i32
    return %c0_i32, %c0_i32_0 : i32, i32
  }
  func.func @transform_5(%arg0: i32, %arg1: i32) -> (i32, i32, i32) {
    %c0_i32 = arith.constant 0 : i32
    %c0_i32_0 = arith.constant 0 : i32
    return %arg1, %arg0, %c0_i32 : i32, i32, i32
  }
  func.func @transform_6(%arg0: i32, %arg1: i32) -> (i32, i32, i32, i32) {
    %c0_i32 = arith.constant 0 : i32
    %c0_i32_0 = arith.constant 0 : i32
    %c0_i32_1 = arith.constant 0 : i32
    return %arg1, %arg0, %c0_i32, %c0_i32_0 : i32, i32, i32, i32
  }
}

module attributes {stable_mosaic.version = 11 : i64} {
  func.func @_conv_kernel(%arg0: i32, %arg1: i32, %arg2: memref<1x16x128xbf16, #tpu.memory_space<vmem>>, %arg3: memref<1x32x128xbf16, #tpu.memory_space<vmem>>, %arg4: memref<1x16x128xbf16, #tpu.memory_space<vmem>>, %arg5: memref<1x128xf32, #tpu.memory_space<vmem>>, %arg6: memref<1x128xf32, #tpu.memory_space<vmem>>, %arg7: memref<4x128x128xbf16, #tpu.memory_space<vmem>>, %arg8: memref<1x128xf32, #tpu.memory_space<vmem>>, %arg9: memref<1x32x128xbf16, #tpu.memory_space<vmem>>, %arg10: memref<1x1x8x128xf32, #tpu.memory_space<vmem>>) attributes {dimension_semantics = [#tpu.dimension_semantics<parallel>, #tpu.dimension_semantics<parallel>], iteration_bounds = array<i64: 1, 2>, scalar_prefetch = 0 : i64, scratch_operands = 0 : i64, tpu.core_type = #tpu.core_type<tc>, window_params = [{transform_indices = @transform_0, window_bounds = array<i64: 1, 16, 128>}, {transform_indices = @transform_1, window_bounds = array<i64: 1, 32, 128>}, {transform_indices = @transform_2, window_bounds = array<i64: 1, 16, 128>}, {pipeline_mode = #tpu.pipeline_mode<synchronous>, transform_indices = @transform_3, window_bounds = array<i64: 1, 128>}, {pipeline_mode = #tpu.pipeline_mode<synchronous>, transform_indices = @transform_4, window_bounds = array<i64: 1, 128>}, {pipeline_mode = #tpu.pipeline_mode<synchronous>, transform_indices = @transform_5, window_bounds = array<i64: 4, 128, 128>}, {pipeline_mode = #tpu.pipeline_mode<synchronous>, transform_indices = @transform_6, window_bounds = array<i64: 1, 128>}, {transform_indices = @transform_7, window_bounds = array<i64: 1, 32, 128>}, {transform_indices = @transform_8, window_bounds = array<i64: 1, 1, 8, 128>}]} {
    %c0 = arith.constant 0 : index
    %c0_0 = arith.constant 0 : index
    %c0_1 = arith.constant 0 : index
    %0 = vector.load %arg2[%c0, %c0_0, %c0_1] : memref<1x16x128xbf16, #tpu.memory_space<vmem>>, vector<1x16x128xbf16>
    %1 = vector.shape_cast %0 : vector<1x16x128xbf16> to vector<16x128xbf16>
    %c0_2 = arith.constant 0 : index
    %c0_3 = arith.constant 0 : index
    %c0_4 = arith.constant 0 : index
    %2 = vector.load %arg3[%c0_2, %c0_3, %c0_4] : memref<1x32x128xbf16, #tpu.memory_space<vmem>>, vector<1x32x128xbf16>
    %3 = vector.shape_cast %2 : vector<1x32x128xbf16> to vector<32x128xbf16>
    %c0_5 = arith.constant 0 : index
    %c0_6 = arith.constant 0 : index
    %c0_7 = arith.constant 0 : index
    %4 = vector.load %arg4[%c0_5, %c0_6, %c0_7] : memref<1x16x128xbf16, #tpu.memory_space<vmem>>, vector<1x16x128xbf16>
    %5 = vector.shape_cast %4 : vector<1x16x128xbf16> to vector<16x128xbf16>
    %6 = tpu.concatenate %1, %3, %5 in 0 : vector<16x128xbf16>, vector<32x128xbf16>, vector<16x128xbf16> -> vector<64x128xbf16>
    %c32_i32 = arith.constant 32 : i32
    %7 = arith.muli %arg0, %c32_i32 : i32
    %c16_i32 = arith.constant 16 : i32
    %8 = arith.subi %7, %c16_i32 : i32
    %9 = tpu.iota {dimensions = array<i32: 0>} : vector<64x1xi32>
    %10 = vector.broadcast %8 : i32 to vector<64x1xi32>
    %11 = arith.addi %10, %9 : vector<64x1xi32>
    %c0_i32 = arith.constant 0 : i32
    %12 = vector.broadcast %c0_i32 : i32 to vector<64x1xi32>
    %13 = arith.cmpi sge, %11, %12 : vector<64x1xi32>
    %c16_i32_8 = arith.constant 16 : i32
    %14 = vector.broadcast %c16_i32_8 : i32 to vector<64x1xi32>
    %15 = arith.cmpi slt, %11, %14 : vector<64x1xi32>
    %16 = arith.andi %13, %15 : vector<64x1xi1>
    %17 = arith.extf %6 : vector<64x128xbf16> to vector<64x128xf32>
    %c0_9 = arith.constant 0 : index
    %c0_10 = arith.constant 0 : index
    %18 = vector.load %arg5[%c0_9, %c0_10] : memref<1x128xf32, #tpu.memory_space<vmem>>, vector<1x128xf32>
    %19 = vector.broadcast %18 : vector<1x128xf32> to vector<64x128xf32>
    %20 = arith.mulf %17, %19 : vector<64x128xf32>
    %c0_11 = arith.constant 0 : index
    %c0_12 = arith.constant 0 : index
    %21 = vector.load %arg6[%c0_11, %c0_12] : memref<1x128xf32, #tpu.memory_space<vmem>>, vector<1x128xf32>
    %22 = vector.broadcast %21 : vector<1x128xf32> to vector<64x128xf32>
    %23 = arith.addf %20, %22 : vector<64x128xf32>
    %cst = arith.constant 5.000000e-01 : f32
    %24 = vector.broadcast %cst : f32 to vector<64x128xf32>
    %25 = arith.mulf %24, %23 : vector<64x128xf32>
    %cst_13 = arith.constant 4.471500e-02 : f32
    %26 = vector.broadcast %cst_13 : f32 to vector<64x128xf32>
    %27 = arith.mulf %26, %23 : vector<64x128xf32>
    %28 = arith.mulf %27, %23 : vector<64x128xf32>
    %29 = arith.mulf %28, %23 : vector<64x128xf32>
    %30 = arith.addf %23, %29 : vector<64x128xf32>
    %cst_14 = arith.constant 0.797884583 : f32
    %31 = vector.broadcast %cst_14 : f32 to vector<64x128xf32>
    %32 = arith.mulf %31, %30 : vector<64x128xf32>
    %33 = math.tanh %32 : vector<64x128xf32>
    %cst_15 = arith.constant 1.000000e+00 : f32
    %34 = vector.broadcast %cst_15 : f32 to vector<64x128xf32>
    %35 = arith.addf %34, %33 : vector<64x128xf32>
    %36 = arith.mulf %25, %35 : vector<64x128xf32>
    %cst_16 = arith.constant 0.000000e+00 : f32
    %37 = vector.shape_cast %16 : vector<64x1xi1> to vector<64x1xi1>
    %38 = vector.broadcast %37 : vector<64x1xi1> to vector<64x128xi1>
    %39 = vector.broadcast %cst_16 : f32 to vector<64x128xf32>
    %40 = arith.select %38, %36, %39 : vector<64x128xi1>, vector<64x128xf32>
    %41 = arith.truncf %40 : vector<64x128xf32> to vector<64x128xbf16>
    %42 = vector.extract_strided_slice %41 {offsets = [13, 0], sizes = [32, 128], strides = [1, 1]} : vector<64x128xbf16> to vector<32x128xbf16>
    %c0_17 = arith.constant 0 : index
    %c0_18 = arith.constant 0 : index
    %c0_19 = arith.constant 0 : index
    %43 = vector.load %arg7[%c0_17, %c0_18, %c0_19] : memref<4x128x128xbf16, #tpu.memory_space<vmem>>, vector<1x128x128xbf16>
    %44 = vector.shape_cast %43 : vector<1x128x128xbf16> to vector<128x128xbf16>
    %cst_20 = arith.constant dense<0.000000e+00> : vector<32x128xf32>
    %45 = tpu.matmul %42, %44, %cst_20 {dimension_numbers = #tpu.dot_dimension_numbers<[1], [0], [0], [1], [0, 0, 1, 1], [], []>} : vector<32x128xbf16>, vector<128x128xbf16>, vector<32x128xf32> -> vector<32x128xf32>
    %46 = vector.extract_strided_slice %41 {offsets = [15, 0], sizes = [32, 128], strides = [1, 1]} : vector<64x128xbf16> to vector<32x128xbf16>
    %c1 = arith.constant 1 : index
    %c0_21 = arith.constant 0 : index
    %c0_22 = arith.constant 0 : index
    %47 = vector.load %arg7[%c1, %c0_21, %c0_22] : memref<4x128x128xbf16, #tpu.memory_space<vmem>>, vector<1x128x128xbf16>
    %48 = vector.shape_cast %47 : vector<1x128x128xbf16> to vector<128x128xbf16>
    %cst_23 = arith.constant dense<0.000000e+00> : vector<32x128xf32>
    %49 = tpu.matmul %46, %48, %cst_23 {dimension_numbers = #tpu.dot_dimension_numbers<[1], [0], [0], [1], [0, 0, 1, 1], [], []>} : vector<32x128xbf16>, vector<128x128xbf16>, vector<32x128xf32> -> vector<32x128xf32>
    %50 = arith.addf %45, %49 : vector<32x128xf32>
    %51 = vector.extract_strided_slice %41 {offsets = [17, 0], sizes = [32, 128], strides = [1, 1]} : vector<64x128xbf16> to vector<32x128xbf16>
    %c2 = arith.constant 2 : index
    %c0_24 = arith.constant 0 : index
    %c0_25 = arith.constant 0 : index
    %52 = vector.load %arg7[%c2, %c0_24, %c0_25] : memref<4x128x128xbf16, #tpu.memory_space<vmem>>, vector<1x128x128xbf16>
    %53 = vector.shape_cast %52 : vector<1x128x128xbf16> to vector<128x128xbf16>
    %cst_26 = arith.constant dense<0.000000e+00> : vector<32x128xf32>
    %54 = tpu.matmul %51, %53, %cst_26 {dimension_numbers = #tpu.dot_dimension_numbers<[1], [0], [0], [1], [0, 0, 1, 1], [], []>} : vector<32x128xbf16>, vector<128x128xbf16>, vector<32x128xf32> -> vector<32x128xf32>
    %55 = arith.addf %50, %54 : vector<32x128xf32>
    %56 = vector.extract_strided_slice %41 {offsets = [19, 0], sizes = [32, 128], strides = [1, 1]} : vector<64x128xbf16> to vector<32x128xbf16>
    %c3 = arith.constant 3 : index
    %c0_27 = arith.constant 0 : index
    %c0_28 = arith.constant 0 : index
    %57 = vector.load %arg7[%c3, %c0_27, %c0_28] : memref<4x128x128xbf16, #tpu.memory_space<vmem>>, vector<1x128x128xbf16>
    %58 = vector.shape_cast %57 : vector<1x128x128xbf16> to vector<128x128xbf16>
    %cst_29 = arith.constant dense<0.000000e+00> : vector<32x128xf32>
    %59 = tpu.matmul %56, %58, %cst_29 {dimension_numbers = #tpu.dot_dimension_numbers<[1], [0], [0], [1], [0, 0, 1, 1], [], []>} : vector<32x128xbf16>, vector<128x128xbf16>, vector<32x128xf32> -> vector<32x128xf32>
    %60 = arith.addf %55, %59 : vector<32x128xf32>
    %c0_30 = arith.constant 0 : index
    %c0_31 = arith.constant 0 : index
    %61 = vector.load %arg8[%c0_30, %c0_31] : memref<1x128xf32, #tpu.memory_space<vmem>>, vector<1x128xf32>
    %62 = vector.broadcast %61 : vector<1x128xf32> to vector<32x128xf32>
    %63 = arith.addf %60, %62 : vector<32x128xf32>
    %64 = arith.truncf %63 : vector<32x128xf32> to vector<32x128xbf16>
    %c0_32 = arith.constant 0 : index
    %c0_33 = arith.constant 0 : index
    %c0_34 = arith.constant 0 : index
    %65 = vector.load %arg9[%c0_32, %c0_33, %c0_34] : memref<1x32x128xbf16, #tpu.memory_space<vmem>>, vector<1x32x128xbf16>
    %66 = vector.shape_cast %65 : vector<1x32x128xbf16> to vector<32x128xbf16>
    %67 = vector.shape_cast %64 : vector<32x128xbf16> to vector<1x32x128xbf16>
    tpu.vector_store %arg9[%c0_32, %c0_33, %c0_34], %67 {strides = array<i32>} : memref<1x32x128xbf16, #tpu.memory_space<vmem>>, vector<1x32x128xbf16>,
    %c32_i32_35 = arith.constant 32 : i32
    %68 = arith.muli %arg0, %c32_i32_35 : i32
    %69 = tpu.iota {dimensions = array<i32: 0>} : vector<32x1xi32>
    %70 = vector.broadcast %68 : i32 to vector<32x1xi32>
    %71 = arith.addi %70, %69 : vector<32x1xi32>
    %c16_i32_36 = arith.constant 16 : i32
    %72 = vector.broadcast %c16_i32_36 : i32 to vector<32x1xi32>
    %73 = arith.cmpi slt, %71, %72 : vector<32x1xi32>
    %cst_37 = arith.constant 0.000000e+00 : f32
    %74 = vector.shape_cast %73 : vector<32x1xi1> to vector<32x1xi1>
    %75 = vector.broadcast %74 : vector<32x1xi1> to vector<32x128xi1>
    %76 = vector.broadcast %cst_37 : f32 to vector<32x128xf32>
    %77 = arith.select %75, %63, %76 : vector<32x128xi1>, vector<32x128xf32>
    %cst_38 = arith.constant dense<0.000000e+00> : vector<128xf32>
    %78 = vector.multi_reduction <add>, %77, %cst_38 [0] : vector<32x128xf32> to vector<128xf32>
    %79 = vector.shape_cast %78 : vector<128xf32> to vector<1x128xf32>
    %80 = arith.mulf %77, %77 : vector<32x128xf32>
    %cst_39 = arith.constant dense<0.000000e+00> : vector<128xf32>
    %81 = vector.multi_reduction <add>, %80, %cst_39 [0] : vector<32x128xf32> to vector<128xf32>
    %82 = vector.shape_cast %81 : vector<128xf32> to vector<1x128xf32>
    %cst_40 = arith.constant 0.000000e+00 : f32
    %83 = vector.broadcast %cst_40 : f32 to vector<6x128xf32>
    %84 = tpu.concatenate %79, %82, %83 in 0 : vector<1x128xf32>, vector<1x128xf32>, vector<6x128xf32> -> vector<8x128xf32>
    %c0_41 = arith.constant 0 : index
    %c0_42 = arith.constant 0 : index
    %c0_43 = arith.constant 0 : index
    %c0_44 = arith.constant 0 : index
    %85 = vector.load %arg10[%c0_41, %c0_42, %c0_43, %c0_44] : memref<1x1x8x128xf32, #tpu.memory_space<vmem>>, vector<1x1x8x128xf32>
    %86 = vector.shape_cast %85 : vector<1x1x8x128xf32> to vector<8x128xf32>
    %87 = vector.shape_cast %84 : vector<8x128xf32> to vector<1x1x8x128xf32>
    tpu.vector_store %arg10[%c0_41, %c0_42, %c0_43, %c0_44], %87 {strides = array<i32>} : memref<1x1x8x128xf32, #tpu.memory_space<vmem>>, vector<1x1x8x128xf32>,
    return
  }
  func.func @transform_0(%arg0: i32, %arg1: i32) -> (i32, i32, i32) {
    %c2_i32 = arith.constant 2 : i32
    %0 = arith.muli %arg0, %c2_i32 : i32
    %c1_i32 = arith.constant 1 : i32
    %1 = arith.subi %0, %c1_i32 : i32
    %c0_i32 = arith.constant 0 : i32
    %2 = arith.maxsi %1, %c0_i32 : i32
    %c0_i32_0 = arith.constant 0 : i32
    %c0_i32_1 = arith.constant 0 : i32
    return %arg1, %2, %c0_i32_0 : i32, i32, i32
  }
  func.func @transform_1(%arg0: i32, %arg1: i32) -> (i32, i32, i32) {
    %c0_i32 = arith.constant 0 : i32
    %c0_i32_0 = arith.constant 0 : i32
    return %arg1, %arg0, %c0_i32 : i32, i32, i32
  }
  func.func @transform_2(%arg0: i32, %arg1: i32) -> (i32, i32, i32) {
    %c1_i32 = arith.constant 1 : i32
    %0 = arith.addi %arg0, %c1_i32 : i32
    %c2_i32 = arith.constant 2 : i32
    %1 = arith.muli %0, %c2_i32 : i32
    %c1_i32_0 = arith.constant 1 : i32
    %2 = arith.minsi %1, %c1_i32_0 : i32
    %c0_i32 = arith.constant 0 : i32
    %c0_i32_1 = arith.constant 0 : i32
    return %arg1, %2, %c0_i32 : i32, i32, i32
  }
  func.func @transform_3(%arg0: i32, %arg1: i32) -> (i32, i32) {
    %c0_i32 = arith.constant 0 : i32
    %c0_i32_0 = arith.constant 0 : i32
    %c0_i32_1 = arith.constant 0 : i32
    return %c0_i32, %c0_i32_0 : i32, i32
  }
  func.func @transform_4(%arg0: i32, %arg1: i32) -> (i32, i32) {
    %c0_i32 = arith.constant 0 : i32
    %c0_i32_0 = arith.constant 0 : i32
    %c0_i32_1 = arith.constant 0 : i32
    return %c0_i32, %c0_i32_0 : i32, i32
  }
  func.func @transform_5(%arg0: i32, %arg1: i32) -> (i32, i32, i32) {
    %c0_i32 = arith.constant 0 : i32
    %c0_i32_0 = arith.constant 0 : i32
    %c0_i32_1 = arith.constant 0 : i32
    %c0_i32_2 = arith.constant 0 : i32
    return %c0_i32, %c0_i32_0, %c0_i32_1 : i32, i32, i32
  }
  func.func @transform_6(%arg0: i32, %arg1: i32) -> (i32, i32) {
    %c0_i32 = arith.constant 0 : i32
    %c0_i32_0 = arith.constant 0 : i32
    %c0_i32_1 = arith.constant 0 : i32
    return %c0_i32, %c0_i32_0 : i32, i32
  }
  func.func @transform_7(%arg0: i32, %arg1: i32) -> (i32, i32, i32) {
    %c0_i32 = arith.constant 0 : i32
    %c0_i32_0 = arith.constant 0 : i32
    return %arg1, %arg0, %c0_i32 : i32, i32, i32
  }
  func.func @transform_8(%arg0: i32, %arg1: i32) -> (i32, i32, i32, i32) {
    %c0_i32 = arith.constant 0 : i32
    %c0_i32_0 = arith.constant 0 : i32
    %c0_i32_1 = arith.constant 0 : i32
    return %arg1, %arg0, %c0_i32, %c0_i32_0 : i32, i32, i32, i32
  }
}

</mosaic_0001>

<bundles_post_ra>
// kernel: _lambda_.8
= control target key start
LH: loop header
LB: loop body
LE: loop exit
PB: predicated region body
PF: predicated region fallthrough
CT: control target
= control target key end

     0   :  { %s619_s15 = smov 0   ;;  %s621_s16 = smov 0   ;;  %s666_s0 = inlined_call_operand.vmem [shape: bf16[2,32,128], index: 0, kind: input, shape index: {}]   ;;  %s667_s1 = inlined_call_operand.vmem [shape: f32[1,128], index: 1, kind: input, shape index: {}]   ;;  %s668_s2 = inlined_call_operand.vmem [shape: f32[1,128], index: 2, kind: input, shape index: {}]   ;;  %s669_s3 = inlined_call_operand.vmem [shape: bf16[2,32,128], index: 3, kind: input, shape index: {}]   ;;  %s670_s4 = inlined_call_operand.vmem [shape: bf16[2,32,128], index: 4, kind: output, shape index: {}]  }
   0x1   :  { %s623_s17 = smov 0  }
   0x2 LB: > { %s23_s18 = sadd.s32 1, %s587_s16  ;;  %p507_p0 = scmp.ge.s32.totalorder %s591_s17, 1  ;;  %s591_s17 = sphi %s623_s17, %s14_s17   ;;  %s587_s16 = sphi %s621_s16, %s672_s16   ;;  %s583_s15 = sphi %s619_s15, %s671_s15  }
   0x3   : > { %p24_p1 = scmp.ge.s32.totalorder %s23_s18, 2  ;;  %p200_p2 = scmp.lt.s32.totalorder %s591_s17, 3 }
   0x5   : > { %s674_s18 = smov (%p24_p1, %s23_s18), 0  ;;  %p201_p3 = pnand %p507_p0, %p200_p2 }
   0x6   : > { %p244_p4 = scmp.lt.s32.totalorder (!%p201_p3), %s583_s15, 1 }
   0x7   : > { %204 = sbr.rel (%p201_p3) target bundleno = 56 (0x38), region = 36 }
   0xc   : > { %s676_s15 = smov (!%p244_p4, %s583_s15), 1  ;;  %v593_v0 = vmov 0.0|0.0   ;;  %v514_v4 = vld [vmem:[%s667_s1] ss:$0 sm:$0xff] }
   0xd   : > { %v518_v1 = vcombine.low %v593_v0, %v593_v0  ;;  %v519_v2 = vcombine.high %v593_v0, %v593_v0  ;;  %s522_s19 = sshll.u32 %s676_s15, 4  ;;  %v515_v7 = vld [vmem:[%s668_s2] ss:$0 sm:$0xff] }
   0xe   : > { %s251_s22 = scalar_lea.vmem %s666_s0, %s522_s19  ;;  %s643_s25 = scalar_lea.vmem %s670_s4, %s522_s19 }
   0xf   : > { %v528_v3 = vld [vmem:[%s251_s22] sm:$0xff]   ;;  %396 = vst [vmem:[%s643_s25 + $0x8] sm:$0xf] %v518_v1  ;;  %397 = vst [vmem:[%s643_s25 + $0xc] sm:$0xf] %v519_v2  ;;  %s261_s6 = scalar_lea.vmem %s669_s3, %s522_s19 }
  0x10   : > { %v529_v5 = vunpack.c.l.bf16 %v528_v3  ;;  %v530_v6 = vunpack.c.h.bf16 %v528_v3  ;;  %v532_v22 = vld [vmem:[%s261_s6] sm:$0xff]  }
  0x11   : > { %v533_v28 = vunpack.c.l.bf16 %v532_v22  ;;  %v534_v30 = vunpack.c.h.bf16 %v532_v22 }
  0x12   : > { %v288_v8 = vmul.f32 %v529_v5, %v514_v4  ;;  %v289_v9 = vmul.f32 %v530_v6, %v514_v4 }
  0x14   : > { %v299_v10 = vadd.f32 %v515_v7, %v288_v8  ;;  %v300_v11 = vadd.f32 %v515_v7, %v289_v9 }
  0x16   : > { %v307_v12 = vmul.f32 0.044715, %v299_v10  ;;  %v308_v13 = vmul.f32 0.044715, %v300_v11  ;;  %v303_v23 = vmul.f32 0.5, %v299_v10  ;;  %v304_v25 = vmul.f32 0.5, %v300_v11 }
  0x18   : > { %v311_v14 = vmul.f32 %v307_v12, %v299_v10  ;;  %v312_v15 = vmul.f32 %v308_v13, %v300_v11 }
  0x1a   : > { %v315_v16 = vmul.f32 %v311_v14, %v299_v10  ;;  %v316_v17 = vmul.f32 %v312_v15, %v300_v11 }
  0x1c   : > { %v319_v18 = vadd.f32 %v315_v16, %v299_v10  ;;  %v320_v19 = vadd.f32 %v316_v17, %v300_v11 }
  0x1e   : > { %v323_v20 = vmul.f32 0.7978846, %v319_v18  ;;  %v324_v21 = vmul.f32 0.7978846, %v320_v19 }
  0x20   : > { %565 = vtanh.f32 %v323_v20 }
  0x21   : > { %567 = vtanh.f32 %v324_v21 }
  0x2d   : > { %v566_v24 = vpop.eup %565 }
  0x2e   : > { %v568_v26 = vpop.eup %567  ;;  %v331_v27 = vadd.f32 1.0, %v566_v24 }
  0x2f   : > { %v332_v29 = vadd.f32 1.0, %v568_v26 }
  0x30   : > { %v335_v31 = vmul.f32 %v331_v27, %v303_v23 }
  0x31   : > { %v336_v32 = vmul.f32 %v332_v29, %v304_v25 }
  0x32   : > { %v347_v33 = vadd.f32 %v533_v28, %v335_v31 }
  0x33   : > { %v348_v34 = vadd.f32 %v534_v30, %v336_v32 }
  0x35   : > { %v538_v35 = vpack.c.bf16 %v348_v34, %v347_v33 }
  0x37   : > { %539 = vst [vmem:[%s643_s25] sm:$0xff] %v538_v35  }
  0x38 PF: > { %s14_s17 = sadd.s32 1, %s591_s17   ;;  %s671_s15 = smov %s587_s16 }
  0x39   : > { %p11_p5 = scmp.ge.s32.totalorder %s14_s17, 4   ;;  %s672_s16 = smov %s674_s18 }
  0x3b   :  { %13 = sbr.rel (!%p11_p5) target bundleno = 2 (0x2), region = 69 }

// kernel: _lambda_.6
= control target key start
LH: loop header
LB: loop body
LE: loop exit
PB: predicated region body
PF: predicated region fallthrough
CT: control target
= control target key end

     0   :  { %12 = vsyncpa [#allocation3], 0  ;;  %s1726_s21 = smov 0   ;;  %s1728_s22 = smov 0   ;;  %s1863_s0 = inlined_call_operand.vmem [shape: bf16[2,32,128], index: 0, kind: input, shape index: {}, may-alias: {0,1,2}]   ;;  %s1864_s1 = inlined_call_operand.vmem [shape: bf16[2,32,128], index: 1, kind: input, shape index: {}, may-alias: {0,1,2}]   ;;  %s1865_s2 = inlined_call_operand.vmem [shape: bf16[2,32,128], index: 2, kind: input, shape index: {}, may-alias: {0,1,2}]   ;;  %s1866_s3 = inlined_call_operand.hbm [shape: bf16[4,128,128], index: 3, kind: input, shape index: {}]   ;;  %s1867_s4 = inlined_call_operand.vmem [shape: f32[1,128], index: 4, kind: input, shape index: {}]   ;;  %s1868_s5 = inlined_call_operand.vmem [shape: bf16[2,32,128], index: 5, kind: output, shape index: {0}]   ;;  %s1869_s6 = inlined_call_operand.vmem [shape: f32[2,1,8,128], index: 6, kind: output, shape index: {1}]  }
   0x1   :  { %s1730_s23 = smov 0  }
   0x2 LB: > { %s1349_s24 = sadd.s32 4294967295, %s1683_s23   ;;  %s27_s25 = sadd.s32 1, %s1679_s22  ;;  %s1683_s23 = sphi %s1730_s23, %s18_s23   ;;  %s1679_s22 = sphi %s1728_s22, %s1881_s22   ;;  %s1675_s21 = sphi %s1726_s21, %s1880_s21  }
   0x3   : > { %p28_p0 = scmp.ge.s32.totalorder %s27_s25, 2  ;;  %p1351_p1 = scmp.ge.s32.totalorder %s1683_s23, 1 }
   0x4   : > { %p233_p2 = scmp.lt.s32.totalorder %s1683_s23, 3  ;;  %p1751_p4 = scmp.eq.s32.totalorder %s1349_s24, 0 }
   0x5   : > { %s1883_s25 = smov (%p28_p0, %s27_s25), 0  ;;  %s1685_s28 = smov [#allocation2]  }
   0x6   : > { %p1747_p3 = pnand %p1351_p1, %p233_p2  ;;  %s245_s29 = sshll.u32 %s1685_s28, 4  ;;  %s246_s29 = int_to_ptr.vmem [resolvable:$true] %s245_s29 }
   0x7   : > { %s1642_s30 = scalar_lea.vmem %s246_s29, 4096  ;;  %p1650_p11 = scmp.lt.s32.totalorder %s246_s29, %s246_s29 }
   0x8   : > { %p1559_p5 = pneg %p1747_p3  ;;  %p1643_p8 = scmp.ne.s32.totalorder %s246_s29, %s1642_s30 }
   0x9   : > { %p1651_p12 = scmp.lt.s32.totalorder %s1642_s30, %s1642_s30 }
   0xa   : > { %p1560_p6 = pnand %p1751_p4, %p1559_p5 }
   0xb   : > { %p1652_p13 = por %p1651_p12, %p1650_p11 }
   0xc   : > { %p1633_p7 = pneg %p1560_p6 }
   0xe   : > { %p1645_p9 = pnand %p1643_p8, %p1633_p7 }
  0x10   : > { %p1646_p10 = pneg %p1645_p9 }
  0x12   : > { %p1653_p0 = pnand %p1652_p13, %p1646_p10 }
  0x14   : > { %1656 = shalt.err (!%p1653_p0)
}
  0x15   : > { %s1686_s7 = smov 64   ;;  %s1687_s8 = smov 4  }
  0x16   : > { %1562 = dma.hbm_to_vmem [thread:$0]  (!%p1560_p6), %s1866_s3, 4096, %s246_s29, [#allocation3], %s1686_s7, %s1686_s7, %s1687_s8  }
  0x17   : > { %319 = sbr.rel (%p1747_p3) target bundleno = 320 (0x140), region = 40 }
  0x1c   : > { %1670 = dma.done.wait (%p1751_p4), [#allocation3], 4096  }
  0x1d   : > { %1672 = vsyncadd (%p1751_p4), [#allocation3], 4294963200  ;;  %vm1688_vm0 = vmmov 0   ;;  %vm1689_vm2 = vmmov 1   ;;  %v1595_v2 = vld [vmem:[#allocation2 + $0x78] sm:$0xff]   ;;  %v1597_v4 = vld [vmem:[#allocation2 + $0x70] sm:$0xff]  }
  0x1e   : > { %vm1768_vm1 = vmpackc.low %vm1688_vm0, %vm1688_vm0  ;;  %v1596_v3 = vld [vmem:[#allocation2 + $0x38] sm:$0xff]   ;;  %1475 = vmatprep.subr.bf16.mxu0 %v1595_v2  ;;  %v1598_v5 = vld [vmem:[#allocation2 + $0x30] sm:$0xff]   ;;  %p395_p1 = scmp.lt.s32.totalorder %s1675_s21, 1  ;;  %v1690_v8 = vmov 0   ;;  %vm617_vm6 = vsmask.f32 256 }
  0x1f   : > { %vm1772_vm3 = vmpackc.low %vm1689_vm2, %vm1689_vm2  ;;  %1495 = vmatprep.subr.bf16.mxu1 %v1596_v3  ;;  %1476 = vmatpush3.bf16.msra.mxu0 %v1595_v2  ;;  %v1599_v6 = vld [vmem:[#allocation2 + $0x68] sm:$0xff]   ;;  %v556_v9 = vsel %vm1768_vm1, 65537, %v1690_v8  ;;  %v1601_v10 = vld [vmem:[#allocation2 + $0x60] sm:$0xff]   ;;  %vm740_vm7 = vcmask 1040384   ;;  %vm980_vm8 = vsmask.f32 7424 }
  0x20   : > { %1496 = vmatpush3.bf16.msra.mxu1 %v1596_v3  ;;  %1477 = vmatprep.subr.bf16.mxu0 %v1597_v4  ;;  %v1600_v7 = vld [vmem:[#allocation2 + $0x28] sm:$0xff]   ;;  %s1885_s21 = smov (!%p395_p1, %s1675_s21), 1  ;;  %v558_v11 = vsel %vm1772_vm3, 65537, %v1690_v8  ;;  %v1602_v12 = vld [vmem:[#allocation2 + $0x20] sm:$0xff]   ;;  %v1369_v13 = vcombine.low %v556_v9, %v556_v9  ;;  %v1603_v15 = vld [vmem:[#allocation2 + $0x58] sm:$0xff]   ;;  %vm1170_vm10 = vcmask 1041408  }
  0x21   : > { %1497 = vmatprep.subr.bf16.mxu1 %v1598_v5  ;;  %s1785_s11 = sshll.u32 %s1885_s21, 4  ;;  %v1370_v14 = vcombine.low %v558_v11, %v558_v11  ;;  %v1604_v16 = vld [vmem:[#allocation2 + $0x18] sm:$0xff]   ;;  %v1605_v17 = vld [vmem:[#allocation2 + $0x50] sm:$0xff]   ;;  %v1607_v26 = vld [vmem:[#allocation2 + $0x48] sm:$0xff]   ;;  %s1364_s7 = sshll.u32 %s1885_s21, 3 }
  0x22   : > { %s402_s14 = scalar_lea.vmem %s1863_s0, %s1785_s11  ;;  %s416_s17 = scalar_lea.vmem %s1864_s1, %s1785_s11  ;;  %vm1795_vm4 = vcmp.ne.s16.totalorder %v1369_v13, 0  ;;  %v1606_v19 = vld [vmem:[#allocation2 + $0x10] sm:$0xff]   ;;  %v1608_v27 = vld [vmem:[#allocation2 + $0x8] sm:$0xff]   ;;  %v1609_v39 = vld [vmem:[#allocation2 + $0x40] sm:$0xff]  }
  0x23   : > { %1478 = vmatpush3.bf16.msra.mxu0 %v1597_v4  ;;  %vm1799_vm5 = vcmp.ne.s16.totalorder %v1370_v14, 0  ;;  %v1611_v21 = vld [vmem:[%s402_s14] sm:$0xff]   ;;  %v1805_v23 = vld [vmem:[%s416_s17 + $0x8] sm:$0xff]   ;;  %v1616_v53 = vld [vmem:[#allocation2 + $0xb0] sm:$0xff]   ;;  %s1417_s18 = sadd.s32 8, %s1785_s11  ;;  %s444_s30 = scalar_lea.vmem %s1868_s5, %s1785_s11 }
  0x24   : > { %1498 = vmatpush3.bf16.msra.mxu1 %v1598_v5  ;;  %1479 = vmatprep.subr.bf16.mxu0 %v1599_v6  ;;  %v1803_v22 = vld [vmem:[%s416_s17] sm:$0xff]   ;;  %v580_v24 = vsel %vm1795_vm4, %v1611_v21, 0  ;;  %v1815_v33 = vsel %vm1795_vm4, %v1805_v23, 0  ;;  %v1610_v42 = vld [vmem:[#allocation2] sm:$0xff]   ;;  %v1617_v54 = vld [vmem:[#allocation2 + $0xf0] sm:$0xff]   ;;  %s430_s24 = scalar_lea.vmem %s1865_s2, %s1417_s18  ;;  %s452_s10 = scalar_lea.vmem %s1869_s6, %s1364_s7 }
  0x25   : > { %1499 = vmatprep.subr.bf16.mxu1 %v1600_v7  ;;  %v581_v25 = vsel %vm1799_vm5, %v1803_v22, 0  ;;  %v619_v28 = vshrl.u32 %v580_v24, 16  ;;  %v741_v31 = vrot.slane %v580_v24, 7  ;;  %v631_v36 = vshrl.u32 %v1815_v33, 16  ;;  %v1614_v47 = vld [vmem:[#allocation2 + $0xb8] sm:$0xff]   ;;  %v1618_v56 = vld [vmem:[#allocation2 + $0xa8] sm:$0xff]  }
  0x26   : > { %v623_v29 = vshrl.u32 %v581_v25, 16  ;;  %v626_v30 = vshll.u32 %v581_v25, 16  ;;  %v742_v32 = vrot.slane %v581_v25, 7  ;;  %v634_v38 = vshll.u32 %v1815_v33, 16  ;;  %v1615_v48 = vld [vmem:[#allocation2 + $0xf8] sm:$0xff]   ;;  %v1619_v57 = vld [vmem:[#allocation2 + $0xe8] sm:$0xff]  }
  0x27   : > { %1480 = vmatpush3.bf16.msra.mxu0 %v1599_v6  ;;  %v621_v34 = vrot.slane %v619_v28, 7  ;;  %v633_v41 = vrot.slane %v631_v36, 7  ;;  %v744_v46 = vrot.slane %v1815_v33, 7  ;;  %v1620_v58 = vld [vmem:[#allocation2 + $0xa0] sm:$0xff]   ;;  %v1622_v60 = vld [vmem:[#allocation2 + $0x98] sm:$0xff]   ;;  %v1624_v62 = vld [vmem:[#allocation2 + $0x90] sm:$0xff]  }
  0x28   : > { %1500 = vmatpush3.bf16.msra.mxu1 %v1600_v7  ;;  %1481 = vmatprep.subr.bf16.mxu0 %v1601_v10  ;;  %v625_v35 = vrot.slane %v623_v29, 7  ;;  %v743_v37 = vsel %vm740_vm7, %v741_v31, %v742_v32  ;;  %v981_v45 = vrot.slane %v626_v30, 1  ;;  %v983_v51 = vrot.slane %v634_v38, 1  ;;  %v1621_v59 = vld [vmem:[#allocation2 + $0xe0] sm:$0xff]   ;;  %v1623_v61 = vld [vmem:[#allocation2 + $0xd8] sm:$0xff]   ;;  %v1625_v63 = vld [vmem:[#allocation2 + $0xd0] sm:$0xff]  }
  0x29   : > { %1501 = vmatprep.subr.bf16.mxu1 %v1602_v12  ;;  %1511 = vmatprep.mubr.bf16.mxu1 %v743_v37  ;;  %v636_v44 = vor.u32 %v634_v38, %v633_v41  ;;  %v745_v52 = vsel %vm740_vm7, %v742_v32, %v744_v46  ;;  %v1630_v0 = vld [vmem:[%s430_s24] sm:$0xff]   ;;  %v1626_v1 = vld [vmem:[#allocation2 + $0x88] sm:$0xff]   ;;  %v1628_v4 = vld [vmem:[#allocation2 + $0x80] sm:$0xff]  }
  0x2a   : > { %v628_v40 = vor.u32 %v626_v30, %v625_v35  ;;  %v982_v50 = vor.u32 %v981_v45, %v623_v29  ;;  %v1627_v2 = vld [vmem:[#allocation2 + $0xc8] sm:$0xff]   ;;  %v583_v3 = vsel %vm1795_vm4, %v1630_v0, 0  ;;  %v1629_v6 = vld [vmem:[#allocation2 + $0xc0] sm:$0xff]   ;;  %v985_v7 = vor.u32 %v983_v51, %v631_v36  ;;  %v1407_v33 = vld [vmem:[%s1867_s4] ss:$0 sm:$0xff] }
  0x2b   : > { %1482 = vmatpush3.bf16.msra.mxu0 %v1601_v10  ;;  %v637_v49 = vsel %vm617_vm6, %v625_v35, %v636_v44  ;;  %v987_v5 = vshll.u32 %v583_v3, 16 }
  0x2c   : > { %1502 = vmatpush3.bf16.msra.mxu1 %v1602_v12  ;;  %1483 = vmatprep.subr.bf16.mxu0 %v1603_v15  ;;  %v629_v43 = vsel %vm617_vm6, %v621_v34, %v628_v40  ;;  %v984_v55 = vsel %vm980_vm8, %v982_v50, %v983_v51 }
  0x2d   : > { %1503 = vmatprep.subr.bf16.mxu1 %v1604_v16  ;;  %1491 = vmatprep.mubr.bf16.mxu0 %v629_v43  ;;  %v989_v8 = vrot.slane %v987_v5, 1 }
  0x2f   : > { %1484 = vmatpush3.bf16.msra.mxu0 %v1603_v15  ;;  %v990_v9 = vsel %vm980_vm8, %v985_v7, %v989_v8 }
  0x30   : > { %1504 = vmatpush3.bf16.msra.mxu1 %v1604_v16  ;;  %1485 = vmatprep.subr.bf16.mxu0 %v1605_v17  ;;  %v490_v16 = vlaneseq }
  0x31   : > { %1505 = vmatprep.subr.bf16.mxu1 %v1606_v19 }
  0x32   : > { %v491_v25 = vshrl.u32 %v490_v16, 7 }
  0x33   : > { %1486 = vmatpush3.bf16.msra.mxu0 %v1605_v17 }
  0x34   : > { %1506 = vmatpush3.bf16.msra.mxu1 %v1606_v19  ;;  %1487 = vmatprep.subr.bf16.mxu0 %v1607_v26  ;;  %v493_v32 = vadd.s32 16, %v491_v25 }
  0x35   : > { %1507 = vmatprep.subr.bf16.mxu1 %v1608_v27 }
  0x36   : > { %vm1132_vm9 = vcmp.lt.s32.totalorder %v493_v32, 17 }
  0x37   : > { %1488 = vmatpush3.bf16.msra.mxu0 %v1607_v26 }
  0x38   : > { %1508 = vmatpush3.bf16.msra.mxu1 %v1608_v27  ;;  %1489 = vmatprep.subr.bf16.mxu0 %v1609_v39 }
  0x39   : > { %1509 = vmatprep.subr.bf16.mxu1 %v1610_v42 }
  0x3b   : > { %1490 = vmatpush3.bf16.msra.mxu0 %v1609_v39 }
  0x3c   : > { %1510 = vmatpush3.bf16.msra.mxu1 %v1610_v42  ;;  %1515 = vmatprep.subr.bf16.mxu0 %v1614_v47 }
  0x3d   : > { %1535 = vmatprep.subr.bf16.mxu1 %v1615_v48 }
  0x3e   : > { %1492 = vmatmul.mubr.bf16.vlgmr.msra.gmra.mxu0 %v637_v49 }
  0x3f   : > { %1512 = vmatmul.mubr.bf16.vlgmr.msra.gmra.mxu1 %v745_v52  ;;  %1516 = vmatpush3.bf16.msra.mxu0 %v1614_v47 }
  0x40   : > { %1536 = vmatpush3.bf16.msra.mxu1 %v1615_v48  ;;  %1517 = vmatprep.subr.bf16.mxu0 %v1616_v53 }
  0x41   : > { %1537 = vmatprep.subr.bf16.mxu1 %v1617_v54  ;;  %1531 = vmatprep.mubr.msk.bf16.mxu0 %vm1799_vm5, %v1803_v22 }
  0x42   : > { %1551 = vmatprep.mubr.bf16.mxu1 %v984_v55 }
  0x43   : > { %1518 = vmatpush3.bf16.msra.mxu0 %v1616_v53 }
  0x44   : > { %1538 = vmatpush3.bf16.msra.mxu1 %v1617_v54  ;;  %1519 = vmatprep.subr.bf16.mxu0 %v1618_v56 }
  0x45   : > { %1539 = vmatprep.subr.bf16.mxu1 %v1619_v57 }
  0x47   : > { %1520 = vmatpush3.bf16.msra.mxu0 %v1618_v56 }
  0x48   : > { %1540 = vmatpush3.bf16.msra.mxu1 %v1619_v57  ;;  %1521 = vmatprep.subr.bf16.mxu0 %v1620_v58 }
  0x49   : > { %1541 = vmatprep.subr.bf16.mxu1 %v1621_v59 }
  0x4b   : > { %1522 = vmatpush3.bf16.msra.mxu0 %v1620_v58 }
  0x4c   : > { %1542 = vmatpush3.bf16.msra.mxu1 %v1621_v59  ;;  %1523 = vmatprep.subr.bf16.mxu0 %v1622_v60 }
  0x4d   : > { %1543 = vmatprep.subr.bf16.mxu1 %v1623_v61 }
  0x4f   : > { %1524 = vmatpush3.bf16.msra.mxu0 %v1622_v60 }
  0x50   : > { %1544 = vmatpush3.bf16.msra.mxu1 %v1623_v61  ;;  %1525 = vmatprep.subr.bf16.mxu0 %v1624_v62 }
  0x51   : > { %1545 = vmatprep.subr.bf16.mxu1 %v1625_v63 }
  0x53   : > { %1526 = vmatpush3.bf16.msra.mxu0 %v1624_v62 }
  0x54   : > { %1546 = vmatpush3.bf16.msra.mxu1 %v1625_v63  ;;  %1527 = vmatprep.subr.bf16.mxu0 %v1626_v1 }
  0x55   : > { %1547 = vmatprep.subr.bf16.mxu1 %v1627_v2 }
  0x57   : > { %1528 = vmatpush3.bf16.msra.mxu0 %v1626_v1 }
  0x58   : > { %1548 = vmatpush3.bf16.msra.mxu1 %v1627_v2  ;;  %1529 = vmatprep.subr.bf16.mxu0 %v1628_v4 }
  0x59   : > { %1549 = vmatprep.subr.bf16.mxu1 %v1629_v6 }
  0x5b   : > { %1530 = vmatpush3.bf16.msra.mxu0 %v1628_v4 }
  0x5c   : > { %1550 = vmatpush3.bf16.msra.mxu1 %v1629_v6 }
  0x5e   : > { %1532 = vmatmul.mubr.msk.bf16.vlgmr.msra.gmra.mxu0 %vm1795_vm4, %v1805_v23 }
  0x5f   : > { %1552 = vmatmul.mubr.bf16.vlgmr.msra.gmra.mxu1 %v990_v9 }
  0xfe   : > { %v1493_v10 = vpop.f32.mrf.mxu0 }
  0xff   : > { %v1513_v11 = vpop.f32.mrf.mxu1 }
 0x100   : > { %v722_v12 = vpop.f32.mrf.mxu0  ;;  %v839_v19 = vadd.f32 %v1513_v11, %v1493_v10 }
 0x101   : > { %v830_v13 = vpop.f32.mrf.mxu1 }
 0x102   : > { %v1494_v14 = vpop.f32.mrf.mxu0  ;;  %v831_v22 = vadd.f32 %v830_v13, %v722_v12 }
 0x103   : > { %v1514_v15 = vpop.f32.mrf.mxu1 }
 0x104   : > { %v725_v17 = vpop.f32.mrf.mxu0  ;;  %v842_v28 = vadd.f32 %v1514_v15, %v1494_v14 }
 0x105   : > { %v833_v20 = vpop.f32.mrf.mxu1 }
 0x106   : > { %v834_v31 = vadd.f32 %v833_v20, %v725_v17 }
 0x11e   : > { %v1533_v21 = vpop.f32.mrf.mxu0 }
 0x11f   : > { %v961_v24 = vadd.f32 %v1533_v21, %v839_v19  ;;  %v1553_v26 = vpop.f32.mrf.mxu1 }
 0x120   : > { %v944_v27 = vpop.f32.mrf.mxu0 }
 0x121   : > { %v959_v18 = vadd.f32 %v944_v27, %v831_v22  ;;  %v1075_v23 = vpop.f32.mrf.mxu1  ;;  %v1092_v29 = vadd.f32 %v1553_v26, %v961_v24 }
 0x122   : > { %v1534_v30 = vpop.f32.mrf.mxu0 }
 0x123   : > { %v1090_v34 = vadd.f32 %v1075_v23, %v959_v18  ;;  %v962_v35 = vadd.f32 %v1534_v30, %v842_v28  ;;  %v1554_v36 = vpop.f32.mrf.mxu1  ;;  %v1103_v40 = vadd.f32 %v1407_v33, %v1092_v29 }
 0x124   : > { %v947_v37 = vpop.f32.mrf.mxu0 }
 0x125   : > { %v1093_v38 = vadd.f32 %v1554_v36, %v962_v35  ;;  %v960_v39 = vadd.f32 %v947_v37, %v834_v31  ;;  %v1078_v41 = vpop.f32.mrf.mxu1  ;;  %v1101_v42 = vadd.f32 %v1407_v33, %v1090_v34  ;;  %v1144_v47 = vsel %vm1132_vm9, %v1103_v40, 0.0 }
 0x126   : > { %v1157_v52 = vmul.f32 %v1144_v47, %v1144_v47 }
 0x127   : > { %v1104_v43 = vadd.f32 %v1407_v33, %v1093_v38  ;;  %v1091_v44 = vadd.f32 %v1078_v41, %v960_v39  ;;  %v1155_v48 = vmul.f32 %v1101_v42, %v1101_v42 }
 0x129   : > { %v1431_v45 = vpack.c.bf16 %v1104_v43, %v1103_v40  ;;  %v1102_v46 = vadd.f32 %v1407_v33, %v1091_v44 }
 0x12b   : > { %1434 = vst [vmem:[%s444_s30 + $0x8] sm:$0xff] %v1431_v45   ;;  %v1426_v49 = vpack.c.bf16 %v1102_v46, %v1101_v42  ;;  %v1146_v50 = vadd.f32 %v1102_v46, %v1101_v42  ;;  %v1156_v51 = vmul.f32 %v1102_v46, %v1102_v46 }
 0x12d   : > { %1427 = vst [vmem:[%s444_s30] sm:$0xff] %v1426_v49   ;;  %v1147_v53 = vadd.f32 %v1146_v50, %v1144_v47  ;;  %v1159_v54 = vadd.f32 %v1156_v51, %v1155_v48 }
 0x12f   : > { %v1149_v55 = vrot.slane %v1147_v53, 4  ;;  %v1160_v56 = vadd.f32 %v1159_v54, %v1157_v52 }
 0x131   : > { %v1150_v57 = vadd.f32 %v1149_v55, %v1147_v53  ;;  %v1162_v58 = vrot.slane %v1160_v56, 4 }
 0x133   : > { %v1151_v59 = vrot.slane %v1150_v57, 2  ;;  %v1163_v60 = vadd.f32 %v1162_v58, %v1160_v56 }
 0x135   : > { %v1152_v61 = vadd.f32 %v1151_v59, %v1150_v57  ;;  %v1164_v62 = vrot.slane %v1163_v60, 2 }
 0x137   : > { %v1153_v63 = vrot.slane %v1152_v61, 1  ;;  %v1165_v0 = vadd.f32 %v1164_v62, %v1163_v60 }
 0x139   : > { %v1166_v1 = vrot.slane %v1165_v0, 1  ;;  %v1154_v2 = vadd.f32 %v1153_v63, %v1152_v61 }
 0x13b   : > { %v1167_v3 = vadd.f32 %v1166_v1, %v1165_v0 }
 0x13d   : > { %v1169_v4 = vsel %vm740_vm7, %v1154_v2, %v1167_v3 }
 0x13e   : > { %v1171_v5 = vsel %vm1170_vm10, %v1169_v4, 0.0 }
 0x13f   : > { %1172 = vst [vmem:[%s452_s10] sm:$0xff] %v1171_v5 }
 0x140 PF: > { %s18_s23 = sadd.s32 1, %s1683_s23   ;;  %s1880_s21 = smov %s1679_s22 }
 0x141   : > { %p15_p2 = scmp.ge.s32.totalorder %s18_s23, 4   ;;  %s1881_s22 = smov %s1883_s25 }
 0x143   :  { %17 = sbr.rel (!%p15_p2) target bundleno = 2 (0x2), region = 96 }
 0x148   :  { %1223 = vsyncpa [#allocation3], 1 }
 0x149   :  { %1225 = vsyncpa [#allocation3 + $0x1], 1 }

// kernel: _lambda_.7
= control target key start
LH: loop header
LB: loop body
LE: loop exit
PB: predicated region body
PF: predicated region fallthrough
CT: control target
= control target key end

     0   :  { %s1841_s26 = smov 0   ;;  %s1843_s2 = smov 0   ;;  %s1997_s0 = inlined_call_operand.vmem [shape: bf16[2,32,128], index: 0, kind: input, shape index: {}, may-alias: {0,1,2}]   ;;  %s1998_s1 = inlined_call_operand.vmem [shape: bf16[2,32,128], index: 1, kind: input, shape index: {}, may-alias: {0,1,2}]   ;;  %s1999_s2 = inlined_call_operand.vmem [shape: bf16[2,32,128], index: 2, kind: input, shape index: {}, may-alias: {0,1,2}]   ;;  %s2000_s3 = inlined_call_operand.vmem [shape: f32[1,128], index: 3, kind: input, shape index: {}]   ;;  %s2001_s4 = inlined_call_operand.vmem [shape: f32[1,128], index: 4, kind: input, shape index: {}]   ;;  %s2002_s5 = inlined_call_operand.vmem [shape: bf16[4,128,128], index: 5, kind: input, shape index: {}]   ;;  %s2003_s6 = inlined_call_operand.vmem [shape: f32[1,128], index: 6, kind: input, shape index: {}]   ;;  %s2004_s7 = inlined_call_operand.vmem [shape: bf16[2,32,128], index: 7, kind: output, shape index: {0}]   ;;  %s2005_s8 = inlined_call_operand.vmem [shape: f32[2,1,8,128], index: 8, kind: output, shape index: {1}]  }
   0x1   :  { %s1845_s27 = smov 0  }
   0x2 LB: > { %s28_s28 = sadd.s32 1, %s1788_s2  ;;  %p1464_p0 = scmp.ge.s32.totalorder %s1792_s27, 1  ;;  %s1792_s27 = sphi %s1845_s27, %s19_s27   ;;  %s1788_s2 = sphi %s1843_s2, %s2007_s2   ;;  %s1784_s26 = sphi %s1841_s26, %s2006_s26  }
   0x3   : > { %p29_p1 = scmp.ge.s32.totalorder %s28_s28, 2  ;;  %p354_p2 = scmp.lt.s32.totalorder %s1792_s27, 3 }
   0x5   : > { %s2009_s28 = smov (%p29_p1, %s28_s28), 0  ;;  %p355_p3 = pnand %p1464_p0, %p354_p2 }
   0x6   : > { %p448_p4 = scmp.lt.s32.totalorder (!%p355_p3), %s1784_s26, 1 }
   0x7   : > { %358 = sbr.rel (%p355_p3) target bundleno = 320 (0x140), region = 48 }
   0xc   : > { %v1733_v0 = vld [vmem:[%s2002_s5 + $0x38] sm:$0xff]   ;;  %v1735_v2 = vld [vmem:[%s2002_s5 + $0x30] sm:$0xff]   ;;  %v1737_v4 = vld [vmem:[%s2002_s5 + $0x28] sm:$0xff]   ;;  %s2011_s26 = smov (!%p448_p4, %s1784_s26), 1  ;;  %v1794_v46 = vmov 0.0|0.0   ;;  %vm863_vm0 = vcmask 1040384  }
   0xd   : > { %v1734_v1 = vld [vmem:[%s2002_s5 + $0x78] sm:$0xff]   ;;  %1647 = vmatprep.subr.bf16.mxu1 %v1733_v0  ;;  %v1736_v3 = vld [vmem:[%s2002_s5 + $0x70] sm:$0xff]   ;;  %v1738_v5 = vld [vmem:[%s2002_s5 + $0x68] sm:$0xff]   ;;  %s1568_s23 = sshll.u32 %s2011_s26, 4  ;;  %v864_v47 = vrot.slane %v1794_v46, 7  ;;  %v1795_v51 = vmov 0  }
   0xe   : > { %1648 = vmatpush3.bf16.msra.mxu1 %v1733_v0  ;;  %1627 = vmatprep.subr.bf16.mxu0 %v1734_v1  ;;  %v1739_v6 = vld [vmem:[%s2002_s5 + $0x20] sm:$0xff]   ;;  %v1741_v8 = vld [vmem:[%s2002_s5 + $0x18] sm:$0xff]   ;;  %s455_s10 = scalar_lea.vmem %s1998_s1, %s1568_s23  ;;  %v1743_v10 = vld [vmem:[%s2002_s5 + $0x10] sm:$0xff]   ;;  %vm740_vm1 = vsmask.f32 256  ;;  %v744_v52 = vrot.slane %v1795_v51, 7  ;;  %s483_s25 = scalar_lea.vmem %s2004_s7, %s1568_s23 }
   0xf   : > { %1649 = vmatprep.subr.bf16.mxu1 %v1735_v2  ;;  %1628 = vmatpush3.bf16.msra.mxu0 %v1734_v1  ;;  %v1740_v7 = vld [vmem:[%s2002_s5 + $0x60] sm:$0xff]   ;;  %v1742_v9 = vld [vmem:[%s2002_s5 + $0x58] sm:$0xff]   ;;  %v1744_v12 = vld [vmem:[%s2002_s5 + $0x50] sm:$0xff]   ;;  %v1106_v53 = vrot.slane %v1795_v51, 1  ;;  %vm1103_vm2 = vsmask.f32 7424 }
  0x10   : > { %1629 = vmatprep.subr.bf16.mxu0 %v1736_v3  ;;  %v1749_v11 = vld [vmem:[%s455_s10] sm:$0xff]   ;;  %v1745_v17 = vld [vmem:[%s2002_s5 + $0x8] sm:$0xff]   ;;  %v1750_v31 = vld [vmem:[%s2002_s5 + $0xf8] sm:$0xff]   ;;  %s1473_s23 = sshll.u32 %s2011_s26, 3  ;;  %vm1293_vm4 = vcmask 1041408  }
  0x11   : > { %v1478_v13 = vld [vmem:[%s2000_s3] ss:$0 sm:$0xff]  ;;  %v571_v14 = vunpack.c.l.bf16 %v1749_v11  ;;  %v572_v15 = vunpack.c.h.bf16 %v1749_v11  ;;  %v1746_v20 = vld [vmem:[%s2002_s5 + $0x48] sm:$0xff]   ;;  %v1751_v32 = vld [vmem:[%s2002_s5 + $0xb8] sm:$0xff]   ;;  %s491_s9 = scalar_lea.vmem %s2005_s8, %s1473_s23 }
  0x12   : > { %1650 = vmatpush3.bf16.msra.mxu1 %v1735_v2  ;;  %v1479_v16 = vld [vmem:[%s2001_s4] ss:$0 sm:$0xff]  ;;  %v1752_v57 = vld [vmem:[%s2002_s5 + $0xf0] sm:$0xff]   ;;  %v1754_v0 = vld [vmem:[%s2002_s5 + $0xe8] sm:$0xff]  }
  0x13   : > { %1651 = vmatprep.subr.bf16.mxu1 %v1737_v4  ;;  %1630 = vmatpush3.bf16.msra.mxu0 %v1736_v3  ;;  %v586_v18 = vmul.f32 %v1478_v13, %v571_v14  ;;  %v587_v19 = vmul.f32 %v1478_v13, %v572_v15  ;;  %v1747_v23 = vld [vmem:[%s2002_s5] sm:$0xff]   ;;  %v1753_v63 = vld [vmem:[%s2002_s5 + $0xb0] sm:$0xff]   ;;  %v1755_v2 = vld [vmem:[%s2002_s5 + $0xa8] sm:$0xff]  }
  0x14   : > { %1631 = vmatprep.subr.bf16.mxu0 %v1738_v5  ;;  %v1748_v26 = vld [vmem:[%s2002_s5 + $0x40] sm:$0xff]  }
  0x15   : > { %v601_v21 = vadd.f32 %v1479_v16, %v586_v18  ;;  %v602_v22 = vadd.f32 %v1479_v16, %v587_v19  ;;  %v1756_v3 = vld [vmem:[%s2002_s5 + $0xe0] sm:$0xff]  }
  0x16   : > { %1652 = vmatpush3.bf16.msra.mxu1 %v1737_v4  ;;  %v1757_v4 = vld [vmem:[%s2002_s5 + $0xa0] sm:$0xff]  }
  0x17   : > { %1653 = vmatprep.subr.bf16.mxu1 %v1739_v6  ;;  %1632 = vmatpush3.bf16.msra.mxu0 %v1738_v5  ;;  %v617_v24 = vmul.f32 0.044715, %v601_v21  ;;  %v618_v25 = vmul.f32 0.044715, %v602_v22  ;;  %v609_v37 = vmul.f32 0.5, %v601_v21  ;;  %v610_v39 = vmul.f32 0.5, %v602_v22 }
  0x18   : > { %1633 = vmatprep.subr.bf16.mxu0 %v1740_v7  ;;  %v1758_v5 = vld [vmem:[%s2002_s5 + $0xd8] sm:$0xff]   ;;  %v1764_v11 = vld [vmem:[%s2002_s5 + $0xc0] sm:$0xff]  }
  0x19   : > { %v625_v27 = vmul.f32 %v617_v24, %v601_v21  ;;  %v626_v28 = vmul.f32 %v618_v25, %v602_v22 }
  0x1a   : > { %1654 = vmatpush3.bf16.msra.mxu1 %v1739_v6  ;;  %v1759_v6 = vld [vmem:[%s2002_s5 + $0x98] sm:$0xff]  }
  0x1b   : > { %1655 = vmatprep.subr.bf16.mxu1 %v1741_v8  ;;  %1634 = vmatpush3.bf16.msra.mxu0 %v1740_v7  ;;  %v633_v29 = vmul.f32 %v625_v27, %v601_v21  ;;  %v634_v30 = vmul.f32 %v626_v28, %v602_v22  ;;  %v1760_v7 = vld [vmem:[%s2002_s5 + $0xd0] sm:$0xff]  }
  0x1c   : > { %1635 = vmatprep.subr.bf16.mxu0 %v1742_v9 }
  0x1d   : > { %v641_v33 = vadd.f32 %v633_v29, %v601_v21  ;;  %v642_v34 = vadd.f32 %v634_v30, %v602_v22  ;;  %v527_v21 = vlaneseq }
  0x1e   : > { %1656 = vmatpush3.bf16.msra.mxu1 %v1741_v8  ;;  %v1761_v8 = vld [vmem:[%s2002_s5 + $0x90] sm:$0xff]  }
  0x1f   : > { %1657 = vmatprep.subr.bf16.mxu1 %v1743_v10  ;;  %1636 = vmatpush3.bf16.msra.mxu0 %v1742_v9  ;;  %v649_v35 = vmul.f32 0.7978846, %v641_v33  ;;  %v650_v36 = vmul.f32 0.7978846, %v642_v34  ;;  %v1762_v9 = vld [vmem:[%s2002_s5 + $0xc8] sm:$0xff]   ;;  %v528_v27 = vshrl.u32 %v527_v21, 7 }
  0x20   : > { %1637 = vmatprep.subr.bf16.mxu0 %v1744_v12 }
  0x21   : > { %1766 = vtanh.f32 %v649_v35 }
  0x22   : > { %1658 = vmatpush3.bf16.msra.mxu1 %v1743_v10  ;;  %1768 = vtanh.f32 %v650_v36  ;;  %v1763_v10 = vld [vmem:[%s2002_s5 + $0x88] sm:$0xff]   ;;  %v530_v36 = vadd.s32 16, %v528_v27 }
  0x23   : > { %1659 = vmatprep.subr.bf16.mxu1 %v1745_v17  ;;  %1638 = vmatpush3.bf16.msra.mxu0 %v1744_v12  ;;  %v1765_v12 = vld [vmem:[%s2002_s5 + $0x80] sm:$0xff]  }
  0x24   : > { %1639 = vmatprep.subr.bf16.mxu0 %v1746_v20  ;;  %vm1255_vm3 = vcmp.lt.s32.totalorder %v530_v36, 17 }
  0x26   : > { %1660 = vmatpush3.bf16.msra.mxu1 %v1745_v17 }
  0x27   : > { %1661 = vmatprep.subr.bf16.mxu1 %v1747_v23  ;;  %1640 = vmatpush3.bf16.msra.mxu0 %v1746_v20 }
  0x28   : > { %1641 = vmatprep.subr.bf16.mxu0 %v1748_v26 }
  0x2a   : > { %1662 = vmatpush3.bf16.msra.mxu1 %v1747_v23 }
  0x2b   : > { %1687 = vmatprep.subr.bf16.mxu1 %v1750_v31  ;;  %1642 = vmatpush3.bf16.msra.mxu0 %v1748_v26 }
  0x2c   : > { %1667 = vmatprep.subr.bf16.mxu0 %v1751_v32 }
  0x2e   : > { %v1767_v38 = vpop.eup %1766 }
  0x2f   : > { %v1769_v40 = vpop.eup %1768  ;;  %v665_v41 = vadd.f32 1.0, %v1767_v38 }
  0x30   : > { %v666_v42 = vadd.f32 1.0, %v1769_v40 }
  0x31   : > { %v673_v43 = vmul.f32 %v665_v41, %v609_v37  ;;  %v1560_v37 = vld [vmem:[%s2003_s6] ss:$0 sm:$0xff] }
  0x32   : > { %v674_v44 = vmul.f32 %v666_v42, %v610_v39 }
  0x34   : > { %v704_v45 = vpack.c.bf16 %v674_v44, %v673_v43 }
  0x36   : > { %v865_v48 = vrot.slane %v704_v45, 7  ;;  %v746_v49 = vshrl.u32 %v704_v45, 16  ;;  %v749_v50 = vshll.u32 %v704_v45, 16 }
  0x38   : > { %v866_v54 = vsel %vm863_vm0, %v864_v47, %v865_v48  ;;  %v868_v55 = vsel %vm863_vm0, %v865_v48, %v864_v47  ;;  %v748_v56 = vrot.slane %v746_v49, 7  ;;  %v1104_v58 = vrot.slane %v749_v50, 1 }
  0x39   : > { %1663 = vmatprep.mubr.bf16.mxu1 %v866_v54 }
  0x3a   : > { %1664 = vmatmul.mubr.bf16.vlgmr.msra.gmra.mxu1 %v868_v55  ;;  %v751_v59 = vor.u32 %v749_v50, %v748_v56  ;;  %v1105_v60 = vor.u32 %v1104_v58, %v746_v49  ;;  %v760_v61 = vsel %vm740_vm1, %v748_v56, %v744_v52 }
  0x3b   : > { %1688 = vmatpush3.bf16.msra.mxu1 %v1750_v31 }
  0x3c   : > { %v752_v62 = vsel %vm740_vm1, %v744_v52, %v751_v59  ;;  %1689 = vmatprep.subr.bf16.mxu1 %v1752_v57  ;;  %v1107_v1 = vsel %vm1103_vm2, %v1105_v60, %v1106_v53 }
  0x3d   : > { %1643 = vmatprep.mubr.bf16.mxu0 %v752_v62  ;;  %1703 = vmatprep.mubr.bf16.mxu1 %v1107_v1 }
  0x3e   : > { %1644 = vmatmul.mubr.bf16.vlgmr.msra.gmra.mxu0 %v760_v61 }
  0x3f   : > { %1668 = vmatpush3.bf16.msra.mxu0 %v1751_v32  ;;  %1690 = vmatpush3.bf16.msra.mxu1 %v1752_v57 }
  0x40   : > { %1669 = vmatprep.subr.bf16.mxu0 %v1753_v63  ;;  %1691 = vmatprep.subr.bf16.mxu1 %v1754_v0 }
  0x41   : > { %1683 = vmatprep.mubr.bf16.mxu0 %v704_v45 }
  0x43   : > { %1670 = vmatpush3.bf16.msra.mxu0 %v1753_v63  ;;  %1692 = vmatpush3.bf16.msra.mxu1 %v1754_v0 }
  0x44   : > { %1671 = vmatprep.subr.bf16.mxu0 %v1755_v2  ;;  %1693 = vmatprep.subr.bf16.mxu1 %v1756_v3 }
  0x47   : > { %1672 = vmatpush3.bf16.msra.mxu0 %v1755_v2  ;;  %1694 = vmatpush3.bf16.msra.mxu1 %v1756_v3 }
  0x48   : > { %1673 = vmatprep.subr.bf16.mxu0 %v1757_v4  ;;  %1695 = vmatprep.subr.bf16.mxu1 %v1758_v5 }
  0x4b   : > { %1674 = vmatpush3.bf16.msra.mxu0 %v1757_v4  ;;  %1696 = vmatpush3.bf16.msra.mxu1 %v1758_v5 }
  0x4c   : > { %1675 = vmatprep.subr.bf16.mxu0 %v1759_v6  ;;  %1697 = vmatprep.subr.bf16.mxu1 %v1760_v7 }
  0x4f   : > { %1676 = vmatpush3.bf16.msra.mxu0 %v1759_v6  ;;  %1698 = vmatpush3.bf16.msra.mxu1 %v1760_v7 }
  0x50   : > { %1677 = vmatprep.subr.bf16.mxu0 %v1761_v8  ;;  %1699 = vmatprep.subr.bf16.mxu1 %v1762_v9 }
  0x53   : > { %1678 = vmatpush3.bf16.msra.mxu0 %v1761_v8  ;;  %1700 = vmatpush3.bf16.msra.mxu1 %v1762_v9 }
  0x54   : > { %1679 = vmatprep.subr.bf16.mxu0 %v1763_v10  ;;  %1701 = vmatprep.subr.bf16.mxu1 %v1764_v11 }
  0x57   : > { %1680 = vmatpush3.bf16.msra.mxu0 %v1763_v10  ;;  %1702 = vmatpush3.bf16.msra.mxu1 %v1764_v11 }
  0x58   : > { %1681 = vmatprep.subr.bf16.mxu0 %v1765_v12 }
  0x5a   : > { %1704 = vmatmul.mubr.bf16.vlgmr.msra.gmra.mxu1 %v1106_v53 }
  0x5b   : > { %1682 = vmatpush3.bf16.msra.mxu0 %v1765_v12 }
  0x5e   : > { %1684 = vmatmul.mubr.bf16.vlgmr.msra.gmra.mxu0 %v1794_v46 }
  0xfa   : > { %v1665_v13 = vpop.f32.mrf.mxu1 }
  0xfc   : > { %v953_v14 = vpop.f32.mrf.mxu1 }
  0xfe   : > { %v1645_v15 = vpop.f32.mrf.mxu0  ;;  %v1666_v16 = vpop.f32.mrf.mxu1 }
  0xff   : > { %v962_v23 = vadd.f32 %v1665_v13, %v1645_v15 }
 0x100   : > { %v845_v17 = vpop.f32.mrf.mxu0  ;;  %v956_v18 = vpop.f32.mrf.mxu1 }
 0x101   : > { %v954_v26 = vadd.f32 %v953_v14, %v845_v17 }
 0x102   : > { %v1646_v19 = vpop.f32.mrf.mxu0 }
 0x103   : > { %v965_v30 = vadd.f32 %v1666_v16, %v1646_v19 }
 0x104   : > { %v848_v22 = vpop.f32.mrf.mxu0 }
 0x105   : > { %v957_v35 = vadd.f32 %v956_v18, %v848_v22 }
 0x11a   : > { %v1705_v20 = vpop.f32.mrf.mxu1 }
 0x11c   : > { %v1198_v24 = vpop.f32.mrf.mxu1 }
 0x11e   : > { %v1685_v25 = vpop.f32.mrf.mxu0  ;;  %v1706_v33 = vpop.f32.mrf.mxu1 }
 0x11f   : > { %v1084_v28 = vadd.f32 %v1685_v25, %v962_v23 }
 0x120   : > { %v1067_v29 = vpop.f32.mrf.mxu0  ;;  %v1201_v44 = vpop.f32.mrf.mxu1 }
 0x121   : > { %v1082_v31 = vadd.f32 %v1067_v29, %v954_v26  ;;  %v1215_v32 = vadd.f32 %v1705_v20, %v1084_v28 }
 0x122   : > { %v1686_v34 = vpop.f32.mrf.mxu0 }
 0x123   : > { %v1213_v38 = vadd.f32 %v1198_v24, %v1082_v31  ;;  %v1085_v39 = vadd.f32 %v1686_v34, %v965_v30  ;;  %v1226_v43 = vadd.f32 %v1560_v37, %v1215_v32 }
 0x124   : > { %v1070_v40 = vpop.f32.mrf.mxu0 }
 0x125   : > { %v1216_v41 = vadd.f32 %v1706_v33, %v1085_v39  ;;  %v1083_v42 = vadd.f32 %v1070_v40, %v957_v35  ;;  %v1224_v45 = vadd.f32 %v1560_v37, %v1213_v38  ;;  %v1267_v50 = vsel %vm1255_vm3, %v1226_v43, 0.0 }
 0x126   : > { %v1280_v55 = vmul.f32 %v1267_v50, %v1267_v50 }
 0x127   : > { %v1227_v46 = vadd.f32 %v1560_v37, %v1216_v41  ;;  %v1214_v47 = vadd.f32 %v1201_v44, %v1083_v42  ;;  %v1278_v51 = vmul.f32 %v1224_v45, %v1224_v45 }
 0x129   : > { %v1584_v48 = vpack.c.bf16 %v1227_v46, %v1226_v43  ;;  %v1225_v49 = vadd.f32 %v1560_v37, %v1214_v47 }
 0x12b   : > { %1586 = vst [vmem:[%s483_s25 + $0x8] sm:$0xff] %v1584_v48   ;;  %v1579_v52 = vpack.c.bf16 %v1225_v49, %v1224_v45  ;;  %v1269_v53 = vadd.f32 %v1225_v49, %v1224_v45  ;;  %v1279_v54 = vmul.f32 %v1225_v49, %v1225_v49 }
 0x12d   : > { %1580 = vst [vmem:[%s483_s25] sm:$0xff] %v1579_v52   ;;  %v1270_v56 = vadd.f32 %v1269_v53, %v1267_v50  ;;  %v1282_v57 = vadd.f32 %v1279_v54, %v1278_v51 }
 0x12f   : > { %v1272_v58 = vrot.slane %v1270_v56, 4  ;;  %v1283_v59 = vadd.f32 %v1282_v57, %v1280_v55 }
 0x131   : > { %v1273_v60 = vadd.f32 %v1272_v58, %v1270_v56  ;;  %v1285_v61 = vrot.slane %v1283_v59, 4 }
 0x133   : > { %v1274_v62 = vrot.slane %v1273_v60, 2  ;;  %v1286_v63 = vadd.f32 %v1285_v61, %v1283_v59 }
 0x135   : > { %v1275_v0 = vadd.f32 %v1274_v62, %v1273_v60  ;;  %v1287_v1 = vrot.slane %v1286_v63, 2 }
 0x137   : > { %v1276_v2 = vrot.slane %v1275_v0, 1  ;;  %v1288_v3 = vadd.f32 %v1287_v1, %v1286_v63 }
 0x139   : > { %v1289_v4 = vrot.slane %v1288_v3, 1  ;;  %v1277_v5 = vadd.f32 %v1276_v2, %v1275_v0 }
 0x13b   : > { %v1290_v6 = vadd.f32 %v1289_v4, %v1288_v3 }
 0x13d   : > { %v1292_v7 = vsel %vm863_vm0, %v1277_v5, %v1290_v6 }
 0x13e   : > { %v1294_v8 = vsel %vm1293_vm4, %v1292_v7, 0.0 }
 0x13f   : > { %1295 = vst [vmem:[%s491_s9] sm:$0xff] %v1294_v8 }
 0x140 PF: > { %s19_s27 = sadd.s32 1, %s1792_s27   ;;  %s2006_s26 = smov %s1788_s2 }
 0x141   : > { %p16_p5 = scmp.ge.s32.totalorder %s19_s27, 4   ;;  %s2007_s2 = smov %s2009_s28 }
 0x143   :  { %18 = sbr.rel (!%p16_p5) target bundleno = 2 (0x2), region = 99 }

// kernel: _lambda_.9
= control target key start
LH: loop header
LB: loop body
LE: loop exit
PB: predicated region body
PF: predicated region fallthrough
CT: control target
= control target key end

     0   :  { %s1718_s21 = smov 0   ;;  %s1720_s22 = smov 0   ;;  %s1903_s0 = inlined_call_operand.vmem [shape: bf16[2,32,128], index: 0, kind: input, shape index: {}, may-alias: {0,1,2}]   ;;  %s1904_s1 = inlined_call_operand.vmem [shape: bf16[2,32,128], index: 1, kind: input, shape index: {}, may-alias: {0,1,2}]   ;;  %s1905_s2 = inlined_call_operand.vmem [shape: bf16[2,32,128], index: 2, kind: input, shape index: {}, may-alias: {0,1,2}]   ;;  %s1906_s3 = inlined_call_operand.vmem [shape: bf16[4,128,128], index: 3, kind: input, shape index: {}]   ;;  %s1907_s4 = inlined_call_operand.vmem [shape: f32[1,128], index: 4, kind: input, shape index: {}]   ;;  %s1908_s5 = inlined_call_operand.vmem [shape: bf16[2,32,128], index: 5, kind: output, shape index: {0}]   ;;  %s1909_s6 = inlined_call_operand.vmem [shape: f32[2,1,8,128], index: 6, kind: output, shape index: {1}]  }
   0x1   :  { %s1722_s23 = smov 0  }
   0x2 LB: > { %s26_s24 = sadd.s32 1, %s1674_s22  ;;  %p1347_p0 = scmp.ge.s32.totalorder %s1678_s23, 1  ;;  %s1678_s23 = sphi %s1722_s23, %s17_s23   ;;  %s1674_s22 = sphi %s1720_s22, %s1913_s22   ;;  %s1670_s21 = sphi %s1718_s21, %s1912_s21  }
   0x3   : > { %p27_p1 = scmp.ge.s32.totalorder %s26_s24, 2  ;;  %p304_p2 = scmp.lt.s32.totalorder %s1678_s23, 3 }
   0x5   : > { %s1915_s24 = smov (%p27_p1, %s26_s24), 0  ;;  %p305_p3 = pnand %p1347_p0, %p304_p2 }
   0x6   : > { %p380_p4 = scmp.lt.s32.totalorder (!%p305_p3), %s1670_s21, 1 }
   0x7   : > { %308 = sbr.rel (%p305_p3) target bundleno = 301 (0x12d), region = 40 }
   0xc   : > { %v1620_v0 = vld [vmem:[%s1906_s3 + $0x78] sm:$0xff]   ;;  %v1622_v2 = vld [vmem:[%s1906_s3 + $0x70] sm:$0xff]   ;;  %v1624_v4 = vld [vmem:[%s1906_s3 + $0x68] sm:$0xff]   ;;  %s1917_s21 = smov (!%p380_p4, %s1670_s21), 1  ;;  %vm1680_vm0 = vmmov 0   ;;  %vm1681_vm2 = vmmov 1  }
   0xd   : > { %v1621_v1 = vld [vmem:[%s1906_s3 + $0x38] sm:$0xff]   ;;  %1513 = vmatprep.subr.bf16.mxu0 %v1620_v0  ;;  %v1623_v3 = vld [vmem:[%s1906_s3 + $0x30] sm:$0xff]   ;;  %v1625_v5 = vld [vmem:[%s1906_s3 + $0x28] sm:$0xff]   ;;  %s1766_s19 = sshll.u32 %s1917_s21, 4  ;;  %v1682_v16 = vmov 0   ;;  %vm1174_vm10 = vcmask 1040384  }
   0xe   : > { %1533 = vmatprep.subr.bf16.mxu1 %v1621_v1  ;;  %1514 = vmatpush3.bf16.msra.mxu0 %v1620_v0  ;;  %v1626_v6 = vld [vmem:[%s1906_s3 + $0x60] sm:$0xff]   ;;  %v1628_v8 = vld [vmem:[%s1906_s3 + $0x58] sm:$0xff]   ;;  %v1630_v10 = vld [vmem:[%s1906_s3 + $0x50] sm:$0xff]   ;;  %s387_s8 = scalar_lea.vmem %s1903_s0, %s1766_s19  ;;  %s401_s11 = scalar_lea.vmem %s1904_s1, %s1766_s19  ;;  %vm602_vm4 = vsmask.f32 256  ;;  %vm1176_vm11 = vcmask 1041408  }
   0xf   : > { %1534 = vmatpush3.bf16.msra.mxu1 %v1621_v1  ;;  %1515 = vmatprep.subr.bf16.mxu0 %v1622_v2  ;;  %v1627_v7 = vld [vmem:[%s1906_s3 + $0x20] sm:$0xff]   ;;  %v1629_v9 = vld [vmem:[%s1906_s3 + $0x18] sm:$0xff]   ;;  %v1631_v11 = vld [vmem:[%s1906_s3 + $0x10] sm:$0xff]   ;;  %vm722_vm5 = vsmask.f32 1280  ;;  %s1455_s9 = sadd.s32 8, %s1766_s19  ;;  %s429_s27 = scalar_lea.vmem %s1908_s5, %s1766_s19 }
  0x10   : > { %1535 = vmatprep.subr.bf16.mxu1 %v1623_v3  ;;  %v1632_v12 = vld [vmem:[%s1906_s3 + $0x48] sm:$0xff]   ;;  %v1636_v13 = vld [vmem:[%s387_s8] sm:$0xff]   ;;  %vm533_vm1 = vmpackc.low %vm1680_vm0, %vm1680_vm0  ;;  %vm852_vm7 = vsmask.f32 7424  ;;  %s415_s16 = scalar_lea.vmem %s1905_s2, %s1455_s9  ;;  %vm983_vm9 = vsmask.f32 6400 }
  0x11   : > { %v1633_v14 = vld [vmem:[%s1906_s3 + $0x8] sm:$0xff]   ;;  %vm535_vm3 = vmpackc.low %vm1681_vm2, %vm1681_vm2  ;;  %v541_v17 = vsel %vm533_vm1, 65537, %v1682_v16  ;;  %v1637_v18 = vld [vmem:[%s401_s11] sm:$0xff]   ;;  %s1356_s19 = sshll.u32 %s1917_s21, 3 }
  0x12   : > { %1516 = vmatpush3.bf16.msra.mxu0 %v1622_v2  ;;  %v1638_v15 = vld [vmem:[%s401_s11 + $0x8] sm:$0xff]   ;;  %v543_v19 = vsel %vm535_vm3, 65537, %v1682_v16  ;;  %v1361_v20 = vcombine.low %v541_v17, %v541_v17  ;;  %v1634_v22 = vld [vmem:[%s1906_s3 + $0x40] sm:$0xff]   ;;  %v1639_v34 = vld [vmem:[%s1906_s3 + $0xb8] sm:$0xff]   ;;  %s437_s30 = scalar_lea.vmem %s1909_s6, %s1356_s19 }
  0x13   : > { %1536 = vmatpush3.bf16.msra.mxu1 %v1623_v3  ;;  %1517 = vmatprep.subr.bf16.mxu0 %v1624_v4  ;;  %v1362_v21 = vcombine.low %v543_v19, %v543_v19  ;;  %v1635_v24 = vld [vmem:[%s1906_s3] sm:$0xff]   ;;  %v1640_v48 = vld [vmem:[%s1906_s3 + $0xf8] sm:$0xff]   ;;  %v1641_v55 = vld [vmem:[%s1906_s3 + $0xb0] sm:$0xff]  }
  0x14   : > { %1537 = vmatprep.subr.bf16.mxu1 %v1625_v5  ;;  %vm1794_vm6 = vcmp.ne.s16.totalorder %v1361_v20, 0  ;;  %v1642_v59 = vld [vmem:[%s1906_s3 + $0xf0] sm:$0xff]   ;;  %v1643_v1 = vld [vmem:[%s1906_s3 + $0xa8] sm:$0xff]   ;;  %v1653_v17 = vld [vmem:[%s1906_s3 + $0x80] sm:$0xff]  }
  0x15   : > { %vm562_vm8 = vcmp.ne.s16.totalorder %v1362_v21, 0  ;;  %v565_v25 = vsel %vm1794_vm6, %v1636_v13, 0  ;;  %v567_v26 = vsel %vm1794_vm6, %v1638_v15, 0  ;;  %v1644_v2 = vld [vmem:[%s1906_s3 + $0xe8] sm:$0xff]   ;;  %v1654_v20 = vld [vmem:[%s1906_s3 + $0xc0] sm:$0xff]  }
  0x16   : > { %1518 = vmatpush3.bf16.msra.mxu0 %v1624_v4  ;;  %v566_v27 = vsel %vm562_vm8, %v1637_v18, 0  ;;  %v604_v28 = vshrl.u32 %v565_v25, 16  ;;  %v1805_v29 = vshrl.u32 %v567_v26, 16  ;;  %v1807_v30 = vshll.u32 %v567_v26, 16  ;;  %v1651_v13 = vld [vmem:[%s1906_s3 + $0x88] sm:$0xff]  }
  0x17   : > { %1538 = vmatpush3.bf16.msra.mxu1 %v1625_v5  ;;  %1519 = vmatprep.subr.bf16.mxu0 %v1626_v6  ;;  %v608_v31 = vshrl.u32 %v566_v27, 16  ;;  %v611_v32 = vshll.u32 %v566_v27, 16  ;;  %v724_v33 = vshll.u32 %v565_v25, 16  ;;  %v1645_v5 = vld [vmem:[%s1906_s3 + $0xa0] sm:$0xff]   ;;  %v1652_v16 = vld [vmem:[%s1906_s3 + $0xc8] sm:$0xff]  }
  0x18   : > { %1539 = vmatprep.subr.bf16.mxu1 %v1627_v7  ;;  %v606_v35 = vrot.slane %v604_v28, 7  ;;  %v723_v36 = vrot.slane %v604_v28, 6  ;;  %v618_v37 = vrot.slane %v1805_v29, 7  ;;  %v732_v38 = vrot.slane %v1805_v29, 6 }
  0x19   : > { %v610_v39 = vrot.slane %v608_v31, 7  ;;  %v726_v40 = vrot.slane %v724_v33, 7  ;;  %v728_v41 = vrot.slane %v608_v31, 6  ;;  %v729_v42 = vrot.slane %v611_v32, 7 }
  0x1a   : > { %1520 = vmatpush3.bf16.msra.mxu0 %v1626_v6  ;;  %v621_v43 = vor.u32 %v1807_v30, %v618_v37  ;;  %v733_v44 = vrot.slane %v1807_v30, 7  ;;  %v853_v49 = vrot.slane %v611_v32, 1  ;;  %v855_v52 = vrot.slane %v1807_v30, 1  ;;  %v1646_v6 = vld [vmem:[%s1906_s3 + $0xe0] sm:$0xff]  }
  0x1b   : > { %1540 = vmatpush3.bf16.msra.mxu1 %v1627_v7  ;;  %1521 = vmatprep.subr.bf16.mxu0 %v1628_v8  ;;  %v613_v45 = vor.u32 %v611_v32, %v610_v39  ;;  %v727_v46 = vor.u32 %v726_v40, %v723_v36  ;;  %v730_v47 = vor.u32 %v729_v42, %v728_v41  ;;  %v984_v57 = vrot.slane %v608_v31, 1  ;;  %v1647_v7 = vld [vmem:[%s1906_s3 + $0x98] sm:$0xff]  }
  0x1c   : > { %1541 = vmatprep.subr.bf16.mxu1 %v1629_v9  ;;  %v622_v50 = vsel %vm602_vm4, %v610_v39, %v621_v43  ;;  %v734_v51 = vor.u32 %v733_v44, %v732_v38  ;;  %v854_v56 = vor.u32 %v853_v49, %v608_v31  ;;  %v985_v60 = vrot.slane %v611_v32, 2  ;;  %v1445_v49 = vld [vmem:[%s1907_s4] ss:$0 sm:$0xff] }
  0x1d   : > { %v614_v53 = vsel %vm602_vm4, %v606_v35, %v613_v45  ;;  %v731_v54 = vsel %vm722_vm5, %v727_v46, %v730_v47  ;;  %v987_v62 = vrot.slane %v1805_v29, 1  ;;  %v988_v0 = vrot.slane %v1807_v30, 2 }
  0x1e   : > { %1522 = vmatpush3.bf16.msra.mxu0 %v1628_v8  ;;  %1529 = vmatprep.mubr.bf16.mxu0 %v614_v53  ;;  %v735_v58 = vsel %vm722_vm5, %v730_v47, %v734_v51  ;;  %v856_v61 = vsel %vm852_vm7, %v854_v56, %v855_v52  ;;  %v986_v63 = vor.u32 %v985_v60, %v984_v57  ;;  %v1648_v8 = vld [vmem:[%s1906_s3 + $0xd8] sm:$0xff]  }
  0x1f   : > { %1542 = vmatpush3.bf16.msra.mxu1 %v1629_v9  ;;  %1523 = vmatprep.subr.bf16.mxu0 %v1630_v10  ;;  %v989_v3 = vor.u32 %v988_v0, %v987_v62  ;;  %v1655_v9 = vld [vmem:[%s415_s16] sm:$0xff]   ;;  %v857_v21 = vor.u32 %v855_v52, %v1805_v29 }
  0x20   : > { %1543 = vmatprep.subr.bf16.mxu1 %v1631_v11  ;;  %1549 = vmatprep.mubr.bf16.mxu1 %v731_v54 }
  0x21   : > { %v990_v4 = vsel %vm983_vm9, %v986_v63, %v989_v3 }
  0x22   : > { %1524 = vmatpush3.bf16.msra.mxu0 %v1630_v10  ;;  %v1649_v10 = vld [vmem:[%s1906_s3 + $0x90] sm:$0xff]  }
  0x23   : > { %1544 = vmatpush3.bf16.msra.mxu1 %v1631_v11  ;;  %1525 = vmatprep.subr.bf16.mxu0 %v1632_v12  ;;  %v1650_v11 = vld [vmem:[%s1906_s3 + $0xd0] sm:$0xff]  }
  0x24   : > { %1545 = vmatprep.subr.bf16.mxu1 %v1633_v14 }
  0x26   : > { %1526 = vmatpush3.bf16.msra.mxu0 %v1632_v12  ;;  %v568_v12 = vsel %vm1794_vm6, %v1655_v9, 0 }
  0x27   : > { %1546 = vmatpush3.bf16.msra.mxu1 %v1633_v14  ;;  %1527 = vmatprep.subr.bf16.mxu0 %v1634_v22  ;;  %v859_v14 = vshll.u32 %v568_v12, 16  ;;  %v991_v15 = vshrl.u32 %v568_v12, 16 }
  0x28   : > { %1547 = vmatprep.subr.bf16.mxu1 %v1635_v24 }
  0x29   : > { %v993_v18 = vrot.slane %v991_v15, 1  ;;  %v994_v19 = vrot.slane %v859_v14, 2 }
  0x2a   : > { %1528 = vmatpush3.bf16.msra.mxu0 %v1634_v22  ;;  %v861_v22 = vrot.slane %v859_v14, 1 }
  0x2b   : > { %1548 = vmatpush3.bf16.msra.mxu1 %v1635_v24  ;;  %1553 = vmatprep.subr.bf16.mxu0 %v1639_v34  ;;  %v995_v23 = vor.u32 %v994_v19, %v993_v18 }
  0x2c   : > { %1573 = vmatprep.subr.bf16.mxu1 %v1640_v48  ;;  %v862_v24 = vsel %vm852_vm7, %v857_v21, %v861_v22 }
  0x2d   : > { %1530 = vmatmul.mubr.bf16.vlgmr.msra.gmra.mxu0 %v622_v50  ;;  %v996_v25 = vsel %vm983_vm9, %v989_v3, %v995_v23 }
  0x2e   : > { %1550 = vmatmul.mubr.bf16.vlgmr.msra.gmra.mxu1 %v735_v58  ;;  %1554 = vmatpush3.bf16.msra.mxu0 %v1639_v34 }
  0x2f   : > { %1574 = vmatpush3.bf16.msra.mxu1 %v1640_v48  ;;  %1555 = vmatprep.subr.bf16.mxu0 %v1641_v55 }
  0x30   : > { %1575 = vmatprep.subr.bf16.mxu1 %v1642_v59  ;;  %1569 = vmatprep.mubr.bf16.mxu0 %v856_v61 }
  0x31   : > { %1589 = vmatprep.mubr.bf16.mxu1 %v990_v4 }
  0x32   : > { %1556 = vmatpush3.bf16.msra.mxu0 %v1641_v55 }
  0x33   : > { %1576 = vmatpush3.bf16.msra.mxu1 %v1642_v59  ;;  %1557 = vmatprep.subr.bf16.mxu0 %v1643_v1 }
  0x34   : > { %1577 = vmatprep.subr.bf16.mxu1 %v1644_v2 }
  0x36   : > { %1558 = vmatpush3.bf16.msra.mxu0 %v1643_v1 }
  0x37   : > { %1578 = vmatpush3.bf16.msra.mxu1 %v1644_v2  ;;  %1559 = vmatprep.subr.bf16.mxu0 %v1645_v5 }
  0x38   : > { %1579 = vmatprep.subr.bf16.mxu1 %v1646_v6 }
  0x3a   : > { %1560 = vmatpush3.bf16.msra.mxu0 %v1645_v5 }
  0x3b   : > { %1580 = vmatpush3.bf16.msra.mxu1 %v1646_v6  ;;  %1561 = vmatprep.subr.bf16.mxu0 %v1647_v7 }
  0x3c   : > { %1581 = vmatprep.subr.bf16.mxu1 %v1648_v8 }
  0x3e   : > { %1562 = vmatpush3.bf16.msra.mxu0 %v1647_v7 }
  0x3f   : > { %1582 = vmatpush3.bf16.msra.mxu1 %v1648_v8  ;;  %1563 = vmatprep.subr.bf16.mxu0 %v1649_v10 }
  0x40   : > { %1583 = vmatprep.subr.bf16.mxu1 %v1650_v11 }
  0x42   : > { %1564 = vmatpush3.bf16.msra.mxu0 %v1649_v10 }
  0x43   : > { %1584 = vmatpush3.bf16.msra.mxu1 %v1650_v11  ;;  %1565 = vmatprep.subr.bf16.mxu0 %v1651_v13 }
  0x44   : > { %1585 = vmatprep.subr.bf16.mxu1 %v1652_v16 }
  0x46   : > { %1566 = vmatpush3.bf16.msra.mxu0 %v1651_v13 }
  0x47   : > { %1586 = vmatpush3.bf16.msra.mxu1 %v1652_v16  ;;  %1567 = vmatprep.subr.bf16.mxu0 %v1653_v17 }
  0x48   : > { %1587 = vmatprep.subr.bf16.mxu1 %v1654_v20 }
  0x4a   : > { %1568 = vmatpush3.bf16.msra.mxu0 %v1653_v17 }
  0x4b   : > { %1588 = vmatpush3.bf16.msra.mxu1 %v1654_v20 }
  0x4d   : > { %1570 = vmatmul.mubr.bf16.vlgmr.msra.gmra.mxu0 %v862_v24 }
  0x4e   : > { %1590 = vmatmul.mubr.bf16.vlgmr.msra.gmra.mxu1 %v996_v25 }
  0xed   : > { %v1531_v26 = vpop.f32.mrf.mxu0 }
  0xee   : > { %v1551_v27 = vpop.f32.mrf.mxu1 }
  0xef   : > { %v707_v28 = vpop.f32.mrf.mxu0  ;;  %v829_v33 = vadd.f32 %v1551_v27, %v1531_v26 }
  0xf0   : > { %v820_v31 = vpop.f32.mrf.mxu1 }
  0xf1   : > { %v1532_v32 = vpop.f32.mrf.mxu0  ;;  %v821_v36 = vadd.f32 %v820_v31, %v707_v28 }
  0xf2   : > { %v1552_v30 = vpop.f32.mrf.mxu1 }
  0xf3   : > { %v710_v29 = vpop.f32.mrf.mxu0  ;;  %v832_v40 = vadd.f32 %v1552_v30, %v1532_v32 }
  0xf4   : > { %v823_v34 = vpop.f32.mrf.mxu1 }
  0xf5   : > { %v824_v44 = vadd.f32 %v823_v34, %v710_v29 }
 0x10d   : > { %v1571_v35 = vpop.f32.mrf.mxu0 }
 0x10e   : > { %v964_v37 = vadd.f32 %v1571_v35, %v829_v33  ;;  %v1591_v38 = vpop.f32.mrf.mxu1 }
 0x10f   : > { %v947_v39 = vpop.f32.mrf.mxu0 }
 0x110   : > { %v962_v41 = vadd.f32 %v947_v39, %v821_v36  ;;  %v1081_v42 = vpop.f32.mrf.mxu1  ;;  %v1098_v45 = vadd.f32 %v1591_v38, %v964_v37 }
 0x111   : > { %v1572_v43 = vpop.f32.mrf.mxu0 }
 0x112   : > { %v1096_v46 = vadd.f32 %v1081_v42, %v962_v41  ;;  %v965_v47 = vadd.f32 %v1572_v43, %v832_v40  ;;  %v1592_v48 = vpop.f32.mrf.mxu1  ;;  %v1109_v54 = vadd.f32 %v1445_v49, %v1098_v45 }
 0x113   : > { %v950_v50 = vpop.f32.mrf.mxu0 }
 0x114   : > { %v1099_v51 = vadd.f32 %v1592_v48, %v965_v47  ;;  %v963_v52 = vadd.f32 %v950_v50, %v824_v44  ;;  %v1084_v53 = vpop.f32.mrf.mxu1  ;;  %v1107_v55 = vadd.f32 %v1445_v49, %v1096_v46 }
 0x116   : > { %v1110_v56 = vadd.f32 %v1445_v49, %v1099_v51  ;;  %v1097_v57 = vadd.f32 %v1084_v53, %v963_v52  ;;  %v1161_v60 = vmul.f32 %v1107_v55, %v1107_v55 }
 0x118   : > { %v1469_v58 = vpack.c.bf16 %v1110_v56, %v1109_v54  ;;  %v1108_v59 = vadd.f32 %v1445_v49, %v1097_v57 }
 0x11a   : > { %1472 = vst [vmem:[%s429_s27 + $0x8] sm:$0xff] %v1469_v58   ;;  %v1464_v61 = vpack.c.bf16 %v1108_v59, %v1107_v55  ;;  %v1152_v62 = vadd.f32 %v1108_v59, %v1107_v55  ;;  %v1162_v63 = vmul.f32 %v1108_v59, %v1108_v59 }
 0x11c   : > { %1465 = vst [vmem:[%s429_s27] sm:$0xff] %v1464_v61   ;;  %v1155_v0 = vrot.slane %v1152_v62, 4  ;;  %v1165_v1 = vadd.f32 %v1162_v63, %v1161_v60 }
 0x11e   : > { %v1156_v2 = vadd.f32 %v1155_v0, %v1152_v62  ;;  %v1168_v3 = vrot.slane %v1165_v1, 4 }
 0x120   : > { %v1157_v4 = vrot.slane %v1156_v2, 2  ;;  %v1169_v5 = vadd.f32 %v1168_v3, %v1165_v1 }
 0x122   : > { %v1158_v6 = vadd.f32 %v1157_v4, %v1156_v2  ;;  %v1170_v7 = vrot.slane %v1169_v5, 2 }
 0x124   : > { %v1159_v8 = vrot.slane %v1158_v6, 1  ;;  %v1171_v9 = vadd.f32 %v1170_v7, %v1169_v5 }
 0x126   : > { %v1172_v10 = vrot.slane %v1171_v9, 1  ;;  %v1160_v11 = vadd.f32 %v1159_v8, %v1158_v6 }
 0x128   : > { %v1173_v12 = vadd.f32 %v1172_v10, %v1171_v9 }
 0x12a   : > { %v1175_v13 = vsel %vm1174_vm10, %v1160_v11, %v1173_v12 }
 0x12b   : > { %v1177_v14 = vsel %vm1176_vm11, %v1175_v13, 0.0 }
 0x12c   : > { %1178 = vst [vmem:[%s437_s30] sm:$0xff] %v1177_v14 }
 0x12d PF: > { %s17_s23 = sadd.s32 1, %s1678_s23   ;;  %s1912_s21 = smov %s1674_s22 }
 0x12e   : > { %p14_p5 = scmp.ge.s32.totalorder %s17_s23, 4   ;;  %s1913_s22 = smov %s1915_s24 }
 0x130   :  { %16 = sbr.rel (!%p14_p5) target bundleno = 2 (0x2), region = 91 }

// kernel: _lambda_.10
= control target key start
LH: loop header
LB: loop body
LE: loop exit
PB: predicated region body
PF: predicated region fallthrough
CT: control target
= control target key end

     0   :  { %s1860_s26 = smov 0   ;;  %s1862_s2 = smov 0   ;;  %s2016_s0 = inlined_call_operand.vmem [shape: bf16[2,32,128], index: 0, kind: input, shape index: {}, may-alias: {0,1,2}]   ;;  %s2017_s1 = inlined_call_operand.vmem [shape: bf16[2,32,128], index: 1, kind: input, shape index: {}, may-alias: {0,1,2}]   ;;  %s2018_s2 = inlined_call_operand.vmem [shape: bf16[2,32,128], index: 2, kind: input, shape index: {}, may-alias: {0,1,2}]   ;;  %s2019_s3 = inlined_call_operand.vmem [shape: f32[1,128], index: 3, kind: input, shape index: {}]   ;;  %s2020_s4 = inlined_call_operand.vmem [shape: f32[1,128], index: 4, kind: input, shape index: {}]   ;;  %s2021_s5 = inlined_call_operand.vmem [shape: bf16[4,128,128], index: 5, kind: input, shape index: {}]   ;;  %s2022_s6 = inlined_call_operand.vmem [shape: f32[1,128], index: 6, kind: input, shape index: {}]   ;;  %s2023_s7 = inlined_call_operand.vmem [shape: bf16[2,32,128], index: 7, kind: output, shape index: {0}]   ;;  %s2024_s8 = inlined_call_operand.vmem [shape: f32[2,1,8,128], index: 8, kind: output, shape index: {1}]  }
   0x1   :  { %s1864_s27 = smov 0  }
   0x2 LB: > { %s28_s28 = sadd.s32 1, %s1808_s2  ;;  %p1485_p0 = scmp.ge.s32.totalorder %s1812_s27, 1  ;;  %s1812_s27 = sphi %s1864_s27, %s19_s27   ;;  %s1808_s2 = sphi %s1862_s2, %s2026_s2   ;;  %s1804_s26 = sphi %s1860_s26, %s2025_s26  }
   0x3   : > { %p29_p1 = scmp.ge.s32.totalorder %s28_s28, 2  ;;  %p354_p2 = scmp.lt.s32.totalorder %s1812_s27, 3 }
   0x5   : > { %s2028_s28 = smov (%p29_p1, %s28_s28), 0  ;;  %p355_p3 = pnand %p1485_p0, %p354_p2 }
   0x6   : > { %p448_p4 = scmp.lt.s32.totalorder (!%p355_p3), %s1804_s26, 1 }
   0x7   : > { %358 = sbr.rel (%p355_p3) target bundleno = 318 (0x13e), region = 48 }
   0xc   : > { %v1753_v0 = vld [vmem:[%s2021_s5 + $0x78] sm:$0xff]   ;;  %v1755_v2 = vld [vmem:[%s2021_s5 + $0x70] sm:$0xff]   ;;  %v1757_v4 = vld [vmem:[%s2021_s5 + $0x68] sm:$0xff]   ;;  %s2030_s26 = smov (!%p448_p4, %s1804_s26), 1  ;;  %v1814_v45 = vmov 0   ;;  %vm1312_vm4 = vcmask 1040384  }
   0xd   : > { %v1754_v1 = vld [vmem:[%s2021_s5 + $0x38] sm:$0xff]   ;;  %1648 = vmatprep.subr.bf16.mxu0 %v1753_v0  ;;  %v1756_v3 = vld [vmem:[%s2021_s5 + $0x30] sm:$0xff]   ;;  %v1758_v5 = vld [vmem:[%s2021_s5 + $0x28] sm:$0xff]   ;;  %s1589_s23 = sshll.u32 %s2030_s26, 4  ;;  %v744_v46 = vrot.slane %v1814_v45, 7  ;;  %v861_v47 = vrot.slane %v1814_v45, 6 }
   0xe   : > { %1668 = vmatprep.subr.bf16.mxu1 %v1754_v1  ;;  %1649 = vmatpush3.bf16.msra.mxu0 %v1753_v0  ;;  %v1759_v6 = vld [vmem:[%s2021_s5 + $0x60] sm:$0xff]   ;;  %v1761_v8 = vld [vmem:[%s2021_s5 + $0x58] sm:$0xff]   ;;  %s455_s10 = scalar_lea.vmem %s2017_s1, %s1589_s23  ;;  %v1763_v10 = vld [vmem:[%s2021_s5 + $0x50] sm:$0xff]   ;;  %v1946_v51 = vrot.slane %v1814_v45, 1  ;;  %v1126_v52 = vrot.slane %v1814_v45, 2  ;;  %s483_s25 = scalar_lea.vmem %s2023_s7, %s1589_s23  ;;  %vm1314_vm5 = vcmask 1041408  }
   0xf   : > { %1669 = vmatpush3.bf16.msra.mxu1 %v1754_v1  ;;  %1650 = vmatprep.subr.bf16.mxu0 %v1755_v2  ;;  %v1760_v7 = vld [vmem:[%s2021_s5 + $0x20] sm:$0xff]   ;;  %v1762_v9 = vld [vmem:[%s2021_s5 + $0x18] sm:$0xff]   ;;  %v1764_v12 = vld [vmem:[%s2021_s5 + $0x10] sm:$0xff]   ;;  %vm740_vm0 = vsmask.f32 256  ;;  %v865_v53 = vor.u32 %v861_v47, %v744_v46  ;;  %s1494_s23 = sshll.u32 %s2030_s26, 3 }
  0x10   : > { %1670 = vmatprep.subr.bf16.mxu1 %v1756_v3  ;;  %v1769_v11 = vld [vmem:[%s455_s10] sm:$0xff]   ;;  %v1765_v17 = vld [vmem:[%s2021_s5 + $0x48] sm:$0xff]   ;;  %v1770_v31 = vld [vmem:[%s2021_s5 + $0xb8] sm:$0xff]   ;;  %vm860_vm1 = vsmask.f32 1280  ;;  %v1127_v63 = vor.u32 %v1126_v52, %v1946_v51  ;;  %s491_s9 = scalar_lea.vmem %s2024_s8, %s1494_s23 }
  0x11   : > { %v1499_v13 = vld [vmem:[%s2019_s3] ss:$0 sm:$0xff]  ;;  %v571_v14 = vunpack.c.l.bf16 %v1769_v11  ;;  %v572_v15 = vunpack.c.h.bf16 %v1769_v11  ;;  %v1766_v20 = vld [vmem:[%s2021_s5 + $0x8] sm:$0xff]   ;;  %v1771_v32 = vld [vmem:[%s2021_s5 + $0xf8] sm:$0xff]   ;;  %vm990_vm2 = vsmask.f32 7424 }
  0x12   : > { %1651 = vmatpush3.bf16.msra.mxu0 %v1755_v2  ;;  %v1500_v16 = vld [vmem:[%s2020_s4] ss:$0 sm:$0xff]  ;;  %vm1121_vm3 = vsmask.f32 6400 }
  0x13   : > { %1671 = vmatpush3.bf16.msra.mxu1 %v1756_v3  ;;  %1652 = vmatprep.subr.bf16.mxu0 %v1757_v4  ;;  %v586_v18 = vmul.f32 %v1499_v13, %v571_v14  ;;  %v587_v19 = vmul.f32 %v1499_v13, %v572_v15  ;;  %v1767_v23 = vld [vmem:[%s2021_s5 + $0x40] sm:$0xff]   ;;  %v1778_v13 = vld [vmem:[%s2021_s5 + $0x98] sm:$0xff]   ;;  %v1780_v15 = vld [vmem:[%s2021_s5 + $0x90] sm:$0xff]  }
  0x14   : > { %1672 = vmatprep.subr.bf16.mxu1 %v1758_v5  ;;  %v1768_v26 = vld [vmem:[%s2021_s5] sm:$0xff]   ;;  %v1779_v14 = vld [vmem:[%s2021_s5 + $0xd8] sm:$0xff]  }
  0x15   : > { %v601_v21 = vadd.f32 %v1500_v16, %v586_v18  ;;  %v602_v22 = vadd.f32 %v1500_v16, %v587_v19  ;;  %v1776_v11 = vld [vmem:[%s2021_s5 + $0xa0] sm:$0xff]   ;;  %v1781_v16 = vld [vmem:[%s2021_s5 + $0xd0] sm:$0xff]   ;;  %v1783_v18 = vld [vmem:[%s2021_s5 + $0xc8] sm:$0xff]  }
  0x16   : > { %1653 = vmatpush3.bf16.msra.mxu0 %v1757_v4  ;;  %v1784_v19 = vld [vmem:[%s2021_s5 + $0x80] sm:$0xff]  }
  0x17   : > { %1673 = vmatpush3.bf16.msra.mxu1 %v1758_v5  ;;  %1654 = vmatprep.subr.bf16.mxu0 %v1759_v6  ;;  %v617_v24 = vmul.f32 0.044715, %v601_v21  ;;  %v618_v25 = vmul.f32 0.044715, %v602_v22  ;;  %v609_v37 = vmul.f32 0.5, %v601_v21  ;;  %v610_v39 = vmul.f32 0.5, %v602_v22 }
  0x18   : > { %1674 = vmatprep.subr.bf16.mxu1 %v1760_v7  ;;  %v1772_v5 = vld [vmem:[%s2021_s5 + $0xb0] sm:$0xff]  }
  0x19   : > { %v625_v27 = vmul.f32 %v617_v24, %v601_v21  ;;  %v626_v28 = vmul.f32 %v618_v25, %v602_v22 }
  0x1a   : > { %1655 = vmatpush3.bf16.msra.mxu0 %v1759_v6  ;;  %v1773_v6 = vld [vmem:[%s2021_s5 + $0xf0] sm:$0xff]  }
  0x1b   : > { %1675 = vmatpush3.bf16.msra.mxu1 %v1760_v7  ;;  %1656 = vmatprep.subr.bf16.mxu0 %v1761_v8  ;;  %v633_v29 = vmul.f32 %v625_v27, %v601_v21  ;;  %v634_v30 = vmul.f32 %v626_v28, %v602_v22 }
  0x1c   : > { %1676 = vmatprep.subr.bf16.mxu1 %v1762_v9 }
  0x1d   : > { %v641_v33 = vadd.f32 %v633_v29, %v601_v21  ;;  %v642_v34 = vadd.f32 %v634_v30, %v602_v22 }
  0x1e   : > { %1657 = vmatpush3.bf16.msra.mxu0 %v1761_v8 }
  0x1f   : > { %1677 = vmatpush3.bf16.msra.mxu1 %v1762_v9  ;;  %1658 = vmatprep.subr.bf16.mxu0 %v1763_v10  ;;  %v649_v35 = vmul.f32 0.7978846, %v641_v33  ;;  %v650_v36 = vmul.f32 0.7978846, %v642_v34  ;;  %v1774_v9 = vld [vmem:[%s2021_s5 + $0xa8] sm:$0xff]  }
  0x20   : > { %1678 = vmatprep.subr.bf16.mxu1 %v1764_v12 }
  0x21   : > { %1786 = vtanh.f32 %v649_v35 }
  0x22   : > { %1659 = vmatpush3.bf16.msra.mxu0 %v1763_v10  ;;  %1788 = vtanh.f32 %v650_v36  ;;  %v1775_v10 = vld [vmem:[%s2021_s5 + $0xe8] sm:$0xff]  }
  0x23   : > { %1679 = vmatpush3.bf16.msra.mxu1 %v1764_v12  ;;  %1660 = vmatprep.subr.bf16.mxu0 %v1765_v17  ;;  %v1777_v12 = vld [vmem:[%s2021_s5 + $0xe0] sm:$0xff]  }
  0x24   : > { %1680 = vmatprep.subr.bf16.mxu1 %v1766_v20 }
  0x26   : > { %1661 = vmatpush3.bf16.msra.mxu0 %v1765_v17  ;;  %v1782_v17 = vld [vmem:[%s2021_s5 + $0x88] sm:$0xff]  }
  0x27   : > { %1681 = vmatpush3.bf16.msra.mxu1 %v1766_v20  ;;  %1662 = vmatprep.subr.bf16.mxu0 %v1767_v23  ;;  %v1785_v20 = vld [vmem:[%s2021_s5 + $0xc0] sm:$0xff]  }
  0x28   : > { %1682 = vmatprep.subr.bf16.mxu1 %v1768_v26 }
  0x2a   : > { %1663 = vmatpush3.bf16.msra.mxu0 %v1767_v23 }
  0x2b   : > { %1683 = vmatpush3.bf16.msra.mxu1 %v1768_v26  ;;  %1688 = vmatprep.subr.bf16.mxu0 %v1770_v31 }
  0x2c   : > { %1708 = vmatprep.subr.bf16.mxu1 %v1771_v32 }
  0x2e   : > { %v1787_v38 = vpop.eup %1786 }
  0x2f   : > { %v1789_v40 = vpop.eup %1788  ;;  %v665_v41 = vadd.f32 1.0, %v1787_v38 }
  0x30   : > { %v666_v42 = vadd.f32 1.0, %v1789_v40 }
  0x31   : > { %v673_v43 = vmul.f32 %v665_v41, %v609_v37 }
  0x32   : > { %v674_v44 = vmul.f32 %v666_v42, %v610_v39 }
  0x34   : > { %v704_v48 = vpack.c.bf16 %v674_v44, %v673_v43  ;;  %v1581_v44 = vld [vmem:[%s2022_s6] ss:$0 sm:$0xff] }
  0x36   : > { %v746_v49 = vshrl.u32 %v704_v48, 16  ;;  %v749_v50 = vshll.u32 %v704_v48, 16 }
  0x38   : > { %v748_v54 = vrot.slane %v746_v49, 7  ;;  %v866_v55 = vrot.slane %v746_v49, 6  ;;  %v867_v56 = vrot.slane %v749_v50, 7  ;;  %v991_v57 = vrot.slane %v749_v50, 1 }
  0x39   : > { %v1122_v58 = vrot.slane %v746_v49, 1  ;;  %v1123_v59 = vrot.slane %v749_v50, 2 }
  0x3a   : > { %v751_v60 = vor.u32 %v749_v50, %v748_v54  ;;  %v868_v61 = vor.u32 %v867_v56, %v866_v55  ;;  %v992_v62 = vor.u32 %v991_v57, %v746_v49  ;;  %v760_v0 = vsel %vm740_vm0, %v748_v54, %v744_v46 }
  0x3b   : > { %v1124_v1 = vor.u32 %v1123_v59, %v1122_v58 }
  0x3c   : > { %v752_v2 = vsel %vm740_vm0, %v744_v46, %v751_v60  ;;  %v869_v3 = vsel %vm860_vm1, %v865_v53, %v868_v61  ;;  %v873_v4 = vsel %vm860_vm1, %v868_v61, %v865_v53  ;;  %v994_v7 = vsel %vm990_vm2, %v992_v62, %v1946_v51 }
  0x3d   : > { %1664 = vmatprep.mubr.bf16.mxu0 %v752_v2  ;;  %1684 = vmatprep.mubr.bf16.mxu1 %v869_v3  ;;  %v1128_v8 = vsel %vm1121_vm3, %v1124_v1, %v1127_v63 }
  0x3e   : > { %1665 = vmatmul.mubr.bf16.vlgmr.msra.gmra.mxu0 %v760_v0  ;;  %1685 = vmatmul.mubr.bf16.vlgmr.msra.gmra.mxu1 %v873_v4 }
  0x3f   : > { %1689 = vmatpush3.bf16.msra.mxu0 %v1770_v31  ;;  %1709 = vmatpush3.bf16.msra.mxu1 %v1771_v32 }
  0x40   : > { %1690 = vmatprep.subr.bf16.mxu0 %v1772_v5  ;;  %1710 = vmatprep.subr.bf16.mxu1 %v1773_v6 }
  0x41   : > { %1704 = vmatprep.mubr.bf16.mxu0 %v994_v7  ;;  %1724 = vmatprep.mubr.bf16.mxu1 %v1128_v8 }
  0x43   : > { %1691 = vmatpush3.bf16.msra.mxu0 %v1772_v5  ;;  %1711 = vmatpush3.bf16.msra.mxu1 %v1773_v6 }
  0x44   : > { %1692 = vmatprep.subr.bf16.mxu0 %v1774_v9  ;;  %1712 = vmatprep.subr.bf16.mxu1 %v1775_v10 }
  0x47   : > { %1693 = vmatpush3.bf16.msra.mxu0 %v1774_v9  ;;  %1713 = vmatpush3.bf16.msra.mxu1 %v1775_v10 }
  0x48   : > { %1694 = vmatprep.subr.bf16.mxu0 %v1776_v11  ;;  %1714 = vmatprep.subr.bf16.mxu1 %v1777_v12 }
  0x4b   : > { %1695 = vmatpush3.bf16.msra.mxu0 %v1776_v11  ;;  %1715 = vmatpush3.bf16.msra.mxu1 %v1777_v12 }
  0x4c   : > { %1696 = vmatprep.subr.bf16.mxu0 %v1778_v13  ;;  %1716 = vmatprep.subr.bf16.mxu1 %v1779_v14 }
  0x4f   : > { %1697 = vmatpush3.bf16.msra.mxu0 %v1778_v13  ;;  %1717 = vmatpush3.bf16.msra.mxu1 %v1779_v14 }
  0x50   : > { %1698 = vmatprep.subr.bf16.mxu0 %v1780_v15  ;;  %1718 = vmatprep.subr.bf16.mxu1 %v1781_v16 }
  0x53   : > { %1699 = vmatpush3.bf16.msra.mxu0 %v1780_v15  ;;  %1719 = vmatpush3.bf16.msra.mxu1 %v1781_v16 }
  0x54   : > { %1700 = vmatprep.subr.bf16.mxu0 %v1782_v17  ;;  %1720 = vmatprep.subr.bf16.mxu1 %v1783_v18 }
  0x57   : > { %1701 = vmatpush3.bf16.msra.mxu0 %v1782_v17  ;;  %1721 = vmatpush3.bf16.msra.mxu1 %v1783_v18 }
  0x58   : > { %1702 = vmatprep.subr.bf16.mxu0 %v1784_v19  ;;  %1722 = vmatprep.subr.bf16.mxu1 %v1785_v20 }
  0x5b   : > { %1703 = vmatpush3.bf16.msra.mxu0 %v1784_v19  ;;  %1723 = vmatpush3.bf16.msra.mxu1 %v1785_v20 }
  0x5e   : > { %1705 = vmatmul.mubr.bf16.vlgmr.msra.gmra.mxu0 %v1946_v51  ;;  %1725 = vmatmul.mubr.bf16.vlgmr.msra.gmra.mxu1 %v1127_v63 }
  0xfe   : > { %v1666_v21 = vpop.f32.mrf.mxu0  ;;  %v1686_v22 = vpop.f32.mrf.mxu1 }
  0xff   : > { %v967_v29 = vadd.f32 %v1686_v22, %v1666_v21 }
 0x100   : > { %v845_v23 = vpop.f32.mrf.mxu0  ;;  %v958_v24 = vpop.f32.mrf.mxu1 }
 0x101   : > { %v959_v32 = vadd.f32 %v958_v24, %v845_v23 }
 0x102   : > { %v1667_v25 = vpop.f32.mrf.mxu0  ;;  %v1687_v26 = vpop.f32.mrf.mxu1 }
 0x103   : > { %v970_v36 = vadd.f32 %v1687_v26, %v1667_v25 }
 0x104   : > { %v848_v27 = vpop.f32.mrf.mxu0  ;;  %v961_v28 = vpop.f32.mrf.mxu1 }
 0x105   : > { %v962_v40 = vadd.f32 %v961_v28, %v848_v27 }
 0x11e   : > { %v1706_v30 = vpop.f32.mrf.mxu0  ;;  %v1726_v31 = vpop.f32.mrf.mxu1 }
 0x11f   : > { %v1102_v33 = vadd.f32 %v1706_v30, %v967_v29 }
 0x120   : > { %v1085_v34 = vpop.f32.mrf.mxu0  ;;  %v1219_v35 = vpop.f32.mrf.mxu1 }
 0x121   : > { %v1100_v37 = vadd.f32 %v1085_v34, %v959_v32  ;;  %v1236_v41 = vadd.f32 %v1726_v31, %v1102_v33 }
 0x122   : > { %v1707_v38 = vpop.f32.mrf.mxu0  ;;  %v1727_v39 = vpop.f32.mrf.mxu1 }
 0x123   : > { %v1234_v42 = vadd.f32 %v1219_v35, %v1100_v37  ;;  %v1103_v43 = vadd.f32 %v1707_v38, %v970_v36  ;;  %v1247_v49 = vadd.f32 %v1581_v44, %v1236_v41 }
 0x124   : > { %v1088_v45 = vpop.f32.mrf.mxu0  ;;  %v1222_v48 = vpop.f32.mrf.mxu1 }
 0x125   : > { %v1237_v46 = vadd.f32 %v1727_v39, %v1103_v43  ;;  %v1101_v47 = vadd.f32 %v1088_v45, %v962_v40  ;;  %v1245_v50 = vadd.f32 %v1581_v44, %v1234_v42 }
 0x127   : > { %v1248_v51 = vadd.f32 %v1581_v44, %v1237_v46  ;;  %v1235_v52 = vadd.f32 %v1222_v48, %v1101_v47  ;;  %v1299_v55 = vmul.f32 %v1245_v50, %v1245_v50 }
 0x129   : > { %v1605_v53 = vpack.c.bf16 %v1248_v51, %v1247_v49  ;;  %v1246_v54 = vadd.f32 %v1581_v44, %v1235_v52 }
 0x12b   : > { %1607 = vst [vmem:[%s483_s25 + $0x8] sm:$0xff] %v1605_v53   ;;  %v1600_v56 = vpack.c.bf16 %v1246_v54, %v1245_v50  ;;  %v1290_v57 = vadd.f32 %v1246_v54, %v1245_v50  ;;  %v1300_v58 = vmul.f32 %v1246_v54, %v1246_v54 }
 0x12d   : > { %1601 = vst [vmem:[%s483_s25] sm:$0xff] %v1600_v56   ;;  %v1293_v59 = vrot.slane %v1290_v57, 4  ;;  %v1303_v60 = vadd.f32 %v1300_v58, %v1299_v55 }
 0x12f   : > { %v1294_v61 = vadd.f32 %v1293_v59, %v1290_v57  ;;  %v1306_v62 = vrot.slane %v1303_v60, 4 }
 0x131   : > { %v1295_v63 = vrot.slane %v1294_v61, 2  ;;  %v1307_v0 = vadd.f32 %v1306_v62, %v1303_v60 }
 0x133   : > { %v1296_v1 = vadd.f32 %v1295_v63, %v1294_v61  ;;  %v1308_v2 = vrot.slane %v1307_v0, 2 }
 0x135   : > { %v1297_v3 = vrot.slane %v1296_v1, 1  ;;  %v1309_v4 = vadd.f32 %v1308_v2, %v1307_v0 }
 0x137   : > { %v1310_v5 = vrot.slane %v1309_v4, 1  ;;  %v1298_v6 = vadd.f32 %v1297_v3, %v1296_v1 }
 0x139   : > { %v1311_v7 = vadd.f32 %v1310_v5, %v1309_v4 }
 0x13b   : > { %v1313_v8 = vsel %vm1312_vm4, %v1298_v6, %v1311_v7 }
 0x13c   : > { %v1315_v9 = vsel %vm1314_vm5, %v1313_v8, 0.0 }
 0x13d   : > { %1316 = vst [vmem:[%s491_s9] sm:$0xff] %v1315_v9 }
 0x13e PF: > { %s19_s27 = sadd.s32 1, %s1812_s27   ;;  %s2025_s26 = smov %s1808_s2 }
 0x13f   : > { %p16_p5 = scmp.ge.s32.totalorder %s19_s27, 4   ;;  %s2026_s2 = smov %s2028_s28 }
 0x141   :  { %18 = sbr.rel (!%p16_p5) target bundleno = 2 (0x2), region = 99 }

</bundles_post_ra>
